<compile_context>
chip_gen: v6e
topology: v6e:2x2x1
jax: 0.10.0
libtpu: 0.0.40
codegen_flags: <defaults>
</compile_context>

<pallas_src>
import functools

import jax
import jax.numpy as jnp
from jax.experimental import pallas as pl
from jax.experimental.pallas import tpu as pltpu

EPS_LN = 1e-5     # ChanLayerNorm2D eps
EPS_L2 = 1e-12    # F.normalize eps
VMEM_LIMIT = 32 * 1024 * 1024   # explicit scoped-VMEM limit (safe on v5e/v6e/v7x)


def _pick_tile(L, target):
    """Largest multiple-of-8 divisor of L that is <= target (prefer >=2 tiles)."""
    if L <= 8:
        return L
    target = max(8, min(target, L // 2 if L >= 16 else L))
    for t in range(target, 7, -1):
        if L % t == 0 and t % 8 == 0:
            return t
    return L


# ---------------------------------------------------------------------------
# Kernel 1: fused ChanLayerNorm2D + (to_q | to_kv) 1x1 conv + per-head L2 norm
# (+ softmax scale folded into q).  LN affine (g, b) is pre-folded into W / bias
# in the wrapper, so the kernel computes LN stats once and does a single
# (tl, C) @ (C, 3*inner) matmul.  Outputs are bf16.
# ---------------------------------------------------------------------------
def _fused_norm_qkv_kernel(x_ref, w_ref, bias_ref, ind_ref, indt_ref,
                           q_ref, k_ref, v_ref, *, heads, dh, scale):
    inner = heads * dh
    x = x_ref[0]                                                    # (tl, C) f32
    mean = jnp.mean(x, axis=-1, keepdims=True)
    var = jnp.mean((x - mean) ** 2, axis=-1, keepdims=True)         # unbiased=False
    xn = ((x - mean) * jax.lax.rsqrt(var + EPS_LN)).astype(jnp.bfloat16)
    proj = jnp.dot(xn, w_ref[...],
                   preferred_element_type=jnp.float32) + bias_ref[...]   # (tl, 3*inner)

    q = proj[:, :inner]
    k = proj[:, inner:2 * inner]
    v = proj[:, 2 * inner:]

    ind = ind_ref[...]      # (inner, heads) 0/1 indicator
    ind_t = indt_ref[...]   # (heads, inner)

    # Per-head L2 normalize (F.normalize over dim_head) via indicator matmuls
    # (avoids lane-dim reshapes; tiny MXU ops).  post_scale folds the SDPA scale
    # into q for free.
    def l2n(t, post_scale):
        ss = jnp.dot(t * t, ind, preferred_element_type=jnp.float32)     # (tl, heads)
        inv = jax.lax.rsqrt(jnp.maximum(ss, EPS_L2 * EPS_L2)) * post_scale
        return t * jnp.dot(inv, ind_t, preferred_element_type=jnp.float32)

    q_ref[0] = l2n(q, scale).astype(q_ref.dtype)
    k_ref[0] = l2n(k, 1.0).astype(k_ref.dtype)
    v_ref[0] = v.astype(v_ref.dtype)


def fused_norm_qkv(x, w_cat_bf16, bias_cat, ind, ind_t, *, heads, dim_head):
    B, L, C = x.shape
    inner = heads * dim_head
    tl = _pick_tile(L, 512)
    grid = (B, L // tl)
    scale = 1.0 / (dim_head ** 0.5)                                 # SDPA default scale
    kernel = functools.partial(_fused_norm_qkv_kernel,
                               heads=heads, dh=dim_head, scale=scale)
    # NOTE: w/bias/ind blocks have constant index maps; they could use a single
    # pipeline buffer (pl.Buffered(1)) to save VMEM at production C — negligible here.
    return pl.pallas_call(
        kernel,
        out_shape=(jax.ShapeDtypeStruct((B, L, inner), jnp.bfloat16),
                   jax.ShapeDtypeStruct((B, L, inner), jnp.bfloat16),
                   jax.ShapeDtypeStruct((B, L, inner), jnp.bfloat16)),
        grid=grid,
        in_specs=[
            pl.BlockSpec((1, tl, C), lambda i, j: (i, j, 0)),
            pl.BlockSpec((C, 3 * inner), lambda i, j: (0, 0)),
            pl.BlockSpec((1, 3 * inner), lambda i, j: (0, 0)),
            pl.BlockSpec((inner, heads), lambda i, j: (0, 0)),
            pl.BlockSpec((heads, inner), lambda i, j: (0, 0)),
        ],
        out_specs=(
            pl.BlockSpec((1, tl, inner), lambda i, j: (i, j, 0)),
            pl.BlockSpec((1, tl, inner), lambda i, j: (i, j, 0)),
            pl.BlockSpec((1, tl, inner), lambda i, j: (i, j, 0)),
        ),
        compiler_params=pltpu.CompilerParams(
            dimension_semantics=("parallel", "parallel"),
            vmem_limit_bytes=VMEM_LIMIT),
    )(x, w_cat_bf16, bias_cat, ind, ind_t)


# ---------------------------------------------------------------------------
# Kernel 2: scaled dot-product attention.  q, K, V all arrive lane-dense as
# (B, L(_k), inner) bf16 with q already scaled; heads are split inside the kernel
# via static lane slices; per-head outputs are written to static lane slices of
# the output block (no concat).  bf16 matmuls, f32 softmax stats.
# ---------------------------------------------------------------------------
def _attn_kernel(q_ref, k_ref, v_ref, o_ref, *, heads, dh):
    q = q_ref[0]                                                    # (tq, inner) bf16
    k = k_ref[0]                                                    # (Lk, inner) bf16
    v = v_ref[0]                                                    # (Lk, inner) bf16
    # TODO(synk): block-diagonal head packing (single (tq,inner)@(inner,heads*Lk)
    # matmul) would raise MXU contraction width beyond dh on v6e/v7x; per-head
    # static-slice matmuls kept here for simplicity at small dh.
    for h in range(heads):                                          # static unroll
        lo = h * dh
        hi = lo + dh
        qh = q[:, lo:hi]                                            # (tq, dh)
        kh = k[:, lo:hi]                                            # (Lk, dh)
        vh = v[:, lo:hi]                                            # (Lk, dh)
        s = jax.lax.dot_general(qh, kh, (((1,), (1,)), ((), ())),
                                preferred_element_type=jnp.float32)  # (tq, Lk)
        m = jnp.max(s, axis=-1, keepdims=True)
        p = jnp.exp(s - m)
        denom = jnp.sum(p, axis=-1, keepdims=True)
        oh = jnp.dot(p.astype(jnp.bfloat16), vh,
                     preferred_element_type=jnp.float32)            # (tq, dh)
        o_ref[0, :, lo:hi] = (oh * pl.reciprocal(denom, approx=True)).astype(o_ref.dtype)


def attention(q, k, v, *, heads, dim_head):
    B, L, inner = q.shape
    Lk = k.shape[1]
    tq = _pick_tile(L, 512)
    # TODO(synk): for very large un-pruned Lk a flash-style online-softmax tiling over
    # the key axis would be needed to bound VMEM (earliest limit on v7x's 64 MiB);
    # pruned Lk (~sqrt(H)*sqrt(W)) fits easily.
    return pl.pallas_call(
        functools.partial(_attn_kernel, heads=heads, dh=dim_head),
        out_shape=jax.ShapeDtypeStruct((B, L, inner), jnp.bfloat16),
        grid=(B, L // tq),
        in_specs=[
            pl.BlockSpec((1, tq, inner), lambda i, j: (i, j, 0)),
            pl.BlockSpec((1, Lk, inner), lambda i, j: (i, 0, 0)),
            pl.BlockSpec((1, Lk, inner), lambda i, j: (i, 0, 0)),
        ],
        out_specs=pl.BlockSpec((1, tq, inner), lambda i, j: (i, j, 0)),
        compiler_params=pltpu.CompilerParams(
            dimension_semantics=("parallel", "parallel"),
            vmem_limit_bytes=VMEM_LIMIT),
    )(q, k, v)


# ---------------------------------------------------------------------------
# Kernel 3: to_out 1x1 conv + out_norm + gamma * out + residual.
# ---------------------------------------------------------------------------
def _out_kernel(y_ref, x_ref, w_ref, g_ref, b_ref, gamma_ref, o_ref):
    y = y_ref[0]                                                    # (tl, inner) bf16
    proj = jnp.dot(y, w_ref[...], preferred_element_type=jnp.float32)   # (tl, C) f32
    mean = jnp.mean(proj, axis=-1, keepdims=True)
    var = jnp.mean((proj - mean) ** 2, axis=-1, keepdims=True)
    normed = (proj - mean) * jax.lax.rsqrt(var + EPS_LN) * g_ref[...] + b_ref[...]
    o_ref[0] = (gamma_ref[0] * normed + x_ref[0]).astype(o_ref.dtype)


def out_proj_norm_residual(y, x, w_bf16, g, b, gamma):
    B, L, Ci = y.shape
    C = w_bf16.shape[1]
    tl = _pick_tile(L, 512)
    return pl.pallas_call(
        _out_kernel,
        out_shape=jax.ShapeDtypeStruct((B, L, C), x.dtype),
        grid=(B, L // tl),
        in_specs=[
            pl.BlockSpec((1, tl, Ci), lambda i, j: (i, j, 0)),
            pl.BlockSpec((1, tl, C), lambda i, j: (i, j, 0)),
            pl.BlockSpec((Ci, C), lambda i, j: (0, 0)),
            pl.BlockSpec((1, C), lambda i, j: (0, 0)),
            pl.BlockSpec((1, C), lambda i, j: (0, 0)),
            pl.BlockSpec(memory_space=pltpu.MemorySpace.SMEM),
        ],
        out_specs=pl.BlockSpec((1, tl, C), lambda i, j: (i, j, 0)),
        compiler_params=pltpu.CompilerParams(
            dimension_semantics=("parallel", "parallel"),
            vmem_limit_bytes=VMEM_LIMIT),
    )(y, x, w_bf16, g, b, gamma)


# ---------------------------------------------------------------------------
# DPSA (2D) forward: self-attention, so query_source == context == x.
# ---------------------------------------------------------------------------
def dpsa2d_forward(x_nchw, params, *, heads, dim_head, top_k=-1):
    B, C, H, W = x_nchw.shape
    inner = heads * dim_head
    dh = dim_head
    L = H * W
    # TODO(synk): the NCHW<->NHWC transposes at entry/exit could be fused into
    # kernels 1/3 via in-kernel XLU transposes of (C, tl) blocks; kept in XLA here.
    x = jnp.transpose(x_nchw, (0, 2, 3, 1)).reshape(B, L, C)        # channels-last

    h_top = top_k if top_k > 0 else int(H ** 0.5)
    w_top = top_k if top_k > 0 else int(W ** 0.5)
    need_h = h_top < H
    need_w = w_top < W

    # Fold LN affine into the 1x1-conv weights.  Self-attention: both LNs see the
    # same input, so mean/var are shared; only the (g, b) affine differs and is
    # folded here:  LN(x)@W = xn_base @ (g*W) + (b @ W).
    w_cat = jnp.concatenate(
        [params["qs_g"].reshape(C, 1) * params["w_q"],
         params["ctx_g"].reshape(C, 1) * params["w_kv"]], axis=1)           # (C, 3*inner)
    bias_cat = jnp.concatenate(
        [params["qs_b"] @ params["w_q"], params["ctx_b"] @ params["w_kv"]], axis=1)

    # Per-head indicator matrices for the fused L2-norm epilogue (tiny constants).
    ind = (jnp.arange(inner)[:, None] // dh
           == jnp.arange(heads)[None, :]).astype(jnp.float32)       # (inner, heads)
    ind_t = ind.T                                                   # (heads, inner)

    q, k, v = fused_norm_qkv(x, w_cat.astype(jnp.bfloat16), bias_cat, ind, ind_t,
                             heads=heads, dim_head=dim_head)        # each (B, L, inner) bf16
    # q, k are already L2-normalized per head; q also carries the softmax scale.

    if need_h or need_w:
        # TODO(synk): top-k selection + gather kept in plain JAX (no Pallas top-k on TPU).
        k5 = k.reshape(B, H, W, heads, dh)
        v5 = v.reshape(B, H, W, heads, dh)
        k_abs = jnp.abs(k5)                                         # computed once (as in torch)
        q_probe = q.astype(jnp.float32).reshape(B, L, heads, dh).sum(axis=1)  # (B, heads, dh)
        if need_h:
            k_height = k_abs.sum(axis=2, dtype=jnp.float32)         # (B, H, heads, dh)
            score_r = jnp.einsum("bnc,bhnc->bnh", q_probe, k_height)    # (B, heads, H)
            _, top_h = jax.lax.top_k(score_r, h_top)                # (B, heads, h_top)
            idx = jnp.broadcast_to(
                jnp.transpose(top_h, (0, 2, 1))[:, :, None, :, None],
                (B, h_top, W, heads, dh))
            k5 = jnp.take_along_axis(k5, idx, axis=1)
            v5 = jnp.take_along_axis(v5, idx, axis=1)
        if need_w:
            # Reference einsum 'b h, b c w -> b w' sums q_probe and k_width over
            # channels INDEPENDENTLY (outer sum); reproduced exactly.
            k_width = k_abs.sum(axis=1, dtype=jnp.float32)          # (B, W, heads, dh)
            score_c = (q_probe.sum(axis=-1)[:, :, None]             # (B, heads, 1)
                       * jnp.transpose(k_width.sum(axis=-1), (0, 2, 1)))  # (B, heads, W)
            _, top_w = jax.lax.top_k(score_c, w_top)                # (B, heads, w_top)
            idx = jnp.broadcast_to(
                jnp.transpose(top_w, (0, 2, 1))[:, None, :, :, None],
                (B, k5.shape[1], w_top, heads, dh))
            k5 = jnp.take_along_axis(k5, idx, axis=2)
            v5 = jnp.take_along_axis(v5, idx, axis=2)
        # Lane-dense (B, Lk, inner): pure row-major reshape, no transpose.
        k_att = k5.reshape(B, -1, inner)
        v_att = v5.reshape(B, -1, inner)
    else:
        # Un-pruned fast path: K/V already have the same (B, L, inner) layout as q.
        k_att = k
        v_att = v

    o = attention(q, k_att, v_att, heads=heads, dim_head=dim_head)  # (B, L, inner) bf16

    out = out_proj_norm_residual(o, x, params["w_out"].astype(jnp.bfloat16),
                                 params["out_g"], params["out_b"],
                                 params["gamma"])                   # (B, L, C)
    return jnp.transpose(out.reshape(B, H, W, C), (0, 3, 1, 2))     # back to NCHW


# ---------------------------------------------------------------------------
# Deterministic parameter init (shapes from DPCA2D.__init__).
# ---------------------------------------------------------------------------
def init_params(key, dim, heads, dim_head):
    inner = heads * dim_head
    k1, k2, k3 = jax.random.split(key, 3)
    return dict(
        # conv weights stored transposed: (Cin, Cout) so y = x @ w
        w_kv=jax.random.normal(k1, (dim, 2 * inner), jnp.float32) * (dim ** -0.5),
        w_q=jax.random.normal(k2, (dim, inner), jnp.float32) * (dim ** -0.5),
        w_out=jax.random.normal(k3, (inner, dim), jnp.float32) * (inner ** -0.5),
        ctx_g=jnp.ones((1, dim), jnp.float32),
        ctx_b=jnp.zeros((1, dim), jnp.float32),
        qs_g=jnp.ones((1, dim), jnp.float32),
        qs_b=jnp.zeros((1, dim), jnp.float32),
        out_g=jnp.ones((1, dim), jnp.float32),
        out_b=jnp.zeros((1, dim), jnp.float32),
        # torch inits gamma to 0.0 (output == input); use a nonzero deterministic
        # value here so the full attention path is exercised.
        gamma=jnp.full((1,), 0.5, jnp.float32),
    )


if __name__ == "__main__":
    key = jax.random.PRNGKey(0)
    kx, kp = jax.random.split(key)

    B, dim, H, W = 2, 32, 16, 16
    heads, dim_head = 4, 8          # inner_dim = 32

    x = jax.random.normal(kx, (B, dim, H, W), jnp.float32)          # NCHW like torch
    params = init_params(kp, dim, heads, dim_head)

    # Pruned path (top_k = -1 -> sqrt(H), sqrt(W) selection).
    out_pruned = dpsa2d_forward(x, params, heads=heads, dim_head=dim_head, top_k=-1)
    out_pruned = jax.block_until_ready(out_pruned)

    # Un-pruned fast path (top_k >= spatial dims -> full attention).
    out_full = dpsa2d_forward(x, params, heads=heads, dim_head=dim_head, top_k=16)
    out_full = jax.block_until_ready(out_full)

    assert out_pruned.shape == x.shape and out_pruned.dtype == x.dtype
    assert out_full.shape == x.shape and out_full.dtype == x.dtype
    assert bool(jnp.all(jnp.isfinite(out_pruned)))
    assert bool(jnp.all(jnp.isfinite(out_full)))
    print("KERNEL_OK")
</pallas_src>

<mosaic_0001>
module attributes {stable_mosaic.version = 11 : i64} {
  func.func @_fused_norm_qkv_kernel(%arg0: i32, %arg1: i32, %arg2: memref<1x128x32xf32, #tpu.memory_space<vmem>>, %arg3: memref<32x96xbf16, #tpu.memory_space<vmem>>, %arg4: memref<1x96xf32, #tpu.memory_space<vmem>>, %arg5: memref<32x4xf32, #tpu.memory_space<vmem>>, %arg6: memref<4x32xf32, #tpu.memory_space<vmem>>, %arg7: memref<1x128x32xbf16, #tpu.memory_space<vmem>>, %arg8: memref<1x128x32xbf16, #tpu.memory_space<vmem>>, %arg9: memref<1x128x32xbf16, #tpu.memory_space<vmem>>) attributes {dimension_semantics = [#tpu.dimension_semantics<parallel>, #tpu.dimension_semantics<parallel>], iteration_bounds = array<i64: 2, 2>, scalar_prefetch = 0 : i64, scratch_operands = 0 : i64, tpu.core_type = #tpu.core_type<tc>, window_params = [{transform_indices = @transform_0, window_bounds = array<i64: 1, 128, 32>}, {pipeline_mode = #tpu.pipeline_mode<synchronous>, transform_indices = @transform_1, window_bounds = array<i64: 32, 96>}, {pipeline_mode = #tpu.pipeline_mode<synchronous>, transform_indices = @transform_2, window_bounds = array<i64: 1, 96>}, {pipeline_mode = #tpu.pipeline_mode<synchronous>, transform_indices = @transform_3, window_bounds = array<i64: 32, 4>}, {pipeline_mode = #tpu.pipeline_mode<synchronous>, transform_indices = @transform_4, window_bounds = array<i64: 4, 32>}, {transform_indices = @transform_5, window_bounds = array<i64: 1, 128, 32>}, {transform_indices = @transform_6, window_bounds = array<i64: 1, 128, 32>}, {transform_indices = @transform_7, window_bounds = array<i64: 1, 128, 32>}]} {
    %c0 = arith.constant 0 : index
    %c0_0 = arith.constant 0 : index
    %c0_1 = arith.constant 0 : index
    %0 = vector.load %arg2[%c0, %c0_0, %c0_1] : memref<1x128x32xf32, #tpu.memory_space<vmem>>, vector<1x128x32xf32>
    %1 = vector.shape_cast %0 : vector<1x128x32xf32> to vector<128x32xf32>
    %cst = arith.constant dense<0.000000e+00> : vector<128xf32>
    %2 = vector.multi_reduction <add>, %1, %cst [1] : vector<128x32xf32> to vector<128xf32>
    %3 = vector.shape_cast %2 : vector<128xf32> to vector<128x1xf32>
    %cst_2 = arith.constant 3.200000e+01 : f32
    %4 = vector.broadcast %cst_2 : f32 to vector<128x1xf32>
    %5 = arith.divf %3, %4 : vector<128x1xf32>
    %6 = vector.broadcast %5 : vector<128x1xf32> to vector<128x32xf32>
    %7 = arith.subf %1, %6 : vector<128x32xf32>
    %8 = arith.mulf %7, %7 : vector<128x32xf32>
    %cst_3 = arith.constant dense<0.000000e+00> : vector<128xf32>
    %9 = vector.multi_reduction <add>, %8, %cst_3 [1] : vector<128x32xf32> to vector<128xf32>
    %10 = vector.shape_cast %9 : vector<128xf32> to vector<128x1xf32>
    %cst_4 = arith.constant 3.200000e+01 : f32
    %11 = vector.broadcast %cst_4 : f32 to vector<128x1xf32>
    %12 = arith.divf %10, %11 : vector<128x1xf32>
    %13 = vector.broadcast %5 : vector<128x1xf32> to vector<128x32xf32>
    %14 = arith.subf %1, %13 : vector<128x32xf32>
    %cst_5 = arith.constant 9.99999974E-6 : f32
    %15 = vector.broadcast %cst_5 : f32 to vector<128x1xf32>
    %16 = arith.addf %12, %15 : vector<128x1xf32>
    %17 = math.rsqrt %16 : vector<128x1xf32>
    %18 = vector.broadcast %17 : vector<128x1xf32> to vector<128x32xf32>
    %19 = arith.mulf %14, %18 : vector<128x32xf32>
    %20 = arith.truncf %19 : vector<128x32xf32> to vector<128x32xbf16>
    %c0_6 = arith.constant 0 : index
    %c0_7 = arith.constant 0 : index
    %21 = vector.load %arg3[%c0_6, %c0_7] : memref<32x96xbf16, #tpu.memory_space<vmem>>, vector<32x96xbf16>
    %cst_8 = arith.constant dense<0.000000e+00> : vector<128x96xf32>
    %22 = tpu.matmul %20, %21, %cst_8 {dimension_numbers = #tpu.dot_dimension_numbers<[1], [0], [0], [1], [0, 0, 1, 1], [], []>} : vector<128x32xbf16>, vector<32x96xbf16>, vector<128x96xf32> -> vector<128x96xf32>
    %c0_9 = arith.constant 0 : index
    %c0_10 = arith.constant 0 : index
    %23 = vector.load %arg4[%c0_9, %c0_10] : memref<1x96xf32, #tpu.memory_space<vmem>>, vector<1x96xf32>
    %24 = vector.broadcast %23 : vector<1x96xf32> to vector<128x96xf32>
    %25 = arith.addf %22, %24 : vector<128x96xf32>
    %26 = vector.extract_strided_slice %25 {offsets = [0, 0], sizes = [128, 32], strides = [1, 1]} : vector<128x96xf32> to vector<128x32xf32>
    %27 = vector.extract_strided_slice %25 {offsets = [0, 32], sizes = [128, 32], strides = [1, 1]} : vector<128x96xf32> to vector<128x32xf32>
    %28 = vector.extract_strided_slice %25 {offsets = [0, 64], sizes = [128, 32], strides = [1, 1]} : vector<128x96xf32> to vector<128x32xf32>
    %c0_11 = arith.constant 0 : index
    %c0_12 = arith.constant 0 : index
    %29 = vector.load %arg5[%c0_11, %c0_12] : memref<32x4xf32, #tpu.memory_space<vmem>>, vector<32x4xf32>
    %c0_13 = arith.constant 0 : index
    %c0_14 = arith.constant 0 : index
    %30 = vector.load %arg6[%c0_13, %c0_14] : memref<4x32xf32, #tpu.memory_space<vmem>>, vector<4x32xf32>
    %31 = arith.mulf %26, %26 : vector<128x32xf32>
    %cst_15 = arith.constant dense<0.000000e+00> : vector<128x4xf32>
    %32 = tpu.matmul %31, %29, %cst_15 {dimension_numbers = #tpu.dot_dimension_numbers<[1], [0], [0], [1], [0, 0, 1, 1], [], []>} : vector<128x32xf32>, vector<32x4xf32>, vector<128x4xf32> -> vector<128x4xf32>
    %cst_16 = arith.constant 1.000000e-24 : f32
    %33 = vector.broadcast %cst_16 : f32 to vector<128x4xf32>
    %34 = arith.maximumf %32, %33 : vector<128x4xf32>
    %35 = math.rsqrt %34 : vector<128x4xf32>
    %cst_17 = arith.constant 0.353553385 : f32
    %36 = vector.broadcast %cst_17 : f32 to vector<128x4xf32>
    %37 = arith.mulf %35, %36 : vector<128x4xf32>
    %cst_18 = arith.constant dense<0.000000e+00> : vector<128x32xf32>
    %38 = tpu.matmul %37, %30, %cst_18 {dimension_numbers = #tpu.dot_dimension_numbers<[1], [0], [0], [1], [0, 0, 1, 1], [], []>} : vector<128x4xf32>, vector<4x32xf32>, vector<128x32xf32> -> vector<128x32xf32>
    %39 = arith.mulf %26, %38 : vector<128x32xf32>
    %40 = arith.truncf %39 : vector<128x32xf32> to vector<128x32xbf16>
    %c0_19 = arith.constant 0 : index
    %c0_20 = arith.constant 0 : index
    %c0_21 = arith.constant 0 : index
    %41 = vector.load %arg7[%c0_19, %c0_20, %c0_21] : memref<1x128x32xbf16, #tpu.memory_space<vmem>>, vector<1x128x32xbf16>
    %42 = vector.shape_cast %41 : vector<1x128x32xbf16> to vector<128x32xbf16>
    %43 = vector.shape_cast %40 : vector<128x32xbf16> to vector<1x128x32xbf16>
    tpu.vector_store %arg7[%c0_19, %c0_20, %c0_21], %43 {strides = array<i32>} : memref<1x128x32xbf16, #tpu.memory_space<vmem>>, vector<1x128x32xbf16>,
    %44 = arith.mulf %27, %27 : vector<128x32xf32>
    %cst_22 = arith.constant dense<0.000000e+00> : vector<128x4xf32>
    %45 = tpu.matmul %44, %29, %cst_22 {dimension_numbers = #tpu.dot_dimension_numbers<[1], [0], [0], [1], [0, 0, 1, 1], [], []>} : vector<128x32xf32>, vector<32x4xf32>, vector<128x4xf32> -> vector<128x4xf32>
    %cst_23 = arith.constant 1.000000e-24 : f32
    %46 = vector.broadcast %cst_23 : f32 to vector<128x4xf32>
    %47 = arith.maximumf %45, %46 : vector<128x4xf32>
    %48 = math.rsqrt %47 : vector<128x4xf32>
    %cst_24 = arith.constant 1.000000e+00 : f32
    %49 = vector.broadcast %cst_24 : f32 to vector<128x4xf32>
    %50 = arith.mulf %48, %49 : vector<128x4xf32>
    %cst_25 = arith.constant dense<0.000000e+00> : vector<128x32xf32>
    %51 = tpu.matmul %50, %30, %cst_25 {dimension_numbers = #tpu.dot_dimension_numbers<[1], [0], [0], [1], [0, 0, 1, 1], [], []>} : vector<128x4xf32>, vector<4x32xf32>, vector<128x32xf32> -> vector<128x32xf32>
    %52 = arith.mulf %27, %51 : vector<128x32xf32>
    %53 = arith.truncf %52 : vector<128x32xf32> to vector<128x32xbf16>
    %c0_26 = arith.constant 0 : index
    %c0_27 = arith.constant 0 : index
    %c0_28 = arith.constant 0 : index
    %54 = vector.load %arg8[%c0_26, %c0_27, %c0_28] : memref<1x128x32xbf16, #tpu.memory_space<vmem>>, vector<1x128x32xbf16>
    %55 = vector.shape_cast %54 : vector<1x128x32xbf16> to vector<128x32xbf16>
    %56 = vector.shape_cast %53 : vector<128x32xbf16> to vector<1x128x32xbf16>
    tpu.vector_store %arg8[%c0_26, %c0_27, %c0_28], %56 {strides = array<i32>} : memref<1x128x32xbf16, #tpu.memory_space<vmem>>, vector<1x128x32xbf16>,
    %57 = arith.truncf %28 : vector<128x32xf32> to vector<128x32xbf16>
    %c0_29 = arith.constant 0 : index
    %c0_30 = arith.constant 0 : index
    %c0_31 = arith.constant 0 : index
    %58 = vector.load %arg9[%c0_29, %c0_30, %c0_31] : memref<1x128x32xbf16, #tpu.memory_space<vmem>>, vector<1x128x32xbf16>
    %59 = vector.shape_cast %58 : vector<1x128x32xbf16> to vector<128x32xbf16>
    %60 = vector.shape_cast %57 : vector<128x32xbf16> to vector<1x128x32xbf16>
    tpu.vector_store %arg9[%c0_29, %c0_30, %c0_31], %60 {strides = array<i32>} : memref<1x128x32xbf16, #tpu.memory_space<vmem>>, vector<1x128x32xbf16>,
    return
  }
  func.func @transform_0(%arg0: i32, %arg1: i32) -> (i32, i32, i32) {
    %c0_i32 = arith.constant 0 : i32
    %c0_i32_0 = arith.constant 0 : i32
    return %arg0, %arg1, %c0_i32 : i32, i32, i32
  }
  func.func @transform_1(%arg0: i32, %arg1: i32) -> (i32, i32) {
    %c0_i32 = arith.constant 0 : i32
    %c0_i32_0 = arith.constant 0 : i32
    %c0_i32_1 = arith.constant 0 : i32
    return %c0_i32, %c0_i32_0 : i32, i32
  }
  func.func @transform_2(%arg0: i32, %arg1: i32) -> (i32, i32) {
    %c0_i32 = arith.constant 0 : i32
    %c0_i32_0 = arith.constant 0 : i32
    %c0_i32_1 = arith.constant 0 : i32
    return %c0_i32, %c0_i32_0 : i32, i32
  }
  func.func @transform_3(%arg0: i32, %arg1: i32) -> (i32, i32) {
    %c0_i32 = arith.constant 0 : i32
    %c0_i32_0 = arith.constant 0 : i32
    %c0_i32_1 = arith.constant 0 : i32
    return %c0_i32, %c0_i32_0 : i32, i32
  }
  func.func @transform_4(%arg0: i32, %arg1: i32) -> (i32, i32) {
    %c0_i32 = arith.constant 0 : i32
    %c0_i32_0 = arith.constant 0 : i32
    %c0_i32_1 = arith.constant 0 : i32
    return %c0_i32, %c0_i32_0 : i32, i32
  }
  func.func @transform_5(%arg0: i32, %arg1: i32) -> (i32, i32, i32) {
    %c0_i32 = arith.constant 0 : i32
    %c0_i32_0 = arith.constant 0 : i32
    return %arg0, %arg1, %c0_i32 : i32, i32, i32
  }
  func.func @transform_6(%arg0: i32, %arg1: i32) -> (i32, i32, i32) {
    %c0_i32 = arith.constant 0 : i32
    %c0_i32_0 = arith.constant 0 : i32
    return %arg0, %arg1, %c0_i32 : i32, i32, i32
  }
  func.func @transform_7(%arg0: i32, %arg1: i32) -> (i32, i32, i32) {
    %c0_i32 = arith.constant 0 : i32
    %c0_i32_0 = arith.constant 0 : i32
    return %arg0, %arg1, %c0_i32 : i32, i32, i32
  }
}

</mosaic_0001>

<bundles_post_ra>
// kernel: tpu_custom_call.1
= control target key start
LH: loop header
LB: loop body
LE: loop exit
PB: predicated region body
PF: predicated region fallthrough
CT: control target
= control target key end

     0   :  { %s2869_s24 = smov 0   ;;  %s2871_s25 = smov 0   ;;  %s3523_s0 = inlined_call_operand.vmem [shape: f32[2,256,32], index: 0, kind: input, shape index: {}]   ;;  %s3524_s1 = inlined_call_operand.vmem [shape: bf16[32,96], index: 1, kind: input, shape index: {}]   ;;  %s3525_s2 = inlined_call_operand.vmem [shape: f32[1,96], index: 2, kind: input, shape index: {}]   ;;  %s3526_s3 = inlined_call_operand.vmem [shape: f32[32,4], index: 3, kind: input, shape index: {}]   ;;  %s3527_s4 = inlined_call_operand.vmem [shape: f32[4,32], index: 4, kind: input, shape index: {}]   ;;  %s3528_s5 = inlined_call_operand.vmem [shape: bf16[2,256,32], index: 5, kind: output, shape index: {0}]   ;;  %s3529_s6 = inlined_call_operand.vmem [shape: bf16[2,256,32], index: 6, kind: output, shape index: {1}]   ;;  %s3530_s7 = inlined_call_operand.vmem [shape: bf16[2,256,32], index: 7, kind: output, shape index: {2}]  }
   0x1   :  { %s2873_s26 = smov 0   ;;  %s2875_s27 = smov 0  }
   0x2   :  { %s2877_s28 = smov 0  }
   0x3 LB: > { %s27_s29 = sadd.s32 1, %s2816_s26  ;;  %s30_s30 = sadd.s32 1, %s2820_s27  ;;  %s2824_s28 = sphi %s2877_s28, %s18_s28   ;;  %s2820_s27 = sphi %s2875_s27, %s3534_s27   ;;  %s2816_s26 = sphi %s2873_s26, %s3533_s26   ;;  %s2812_s25 = sphi %s2871_s25, %s3532_s25   ;;  %s2808_s24 = sphi %s2869_s24, %s3531_s24  }
   0x4   : > { %p28_p0 = scmp.ge.s32.totalorder %s27_s29, 2  ;;  %p2233_p1 = scmp.ge.s32.totalorder %s2824_s28, 1 }
   0x5   : > { %p267_p2 = scmp.lt.s32.totalorder %s2824_s28, 5 }
   0x6   : > { %s3536_s29 = smov (%p28_p0, %s27_s29), 0  ;;  %s3538_s30 = smov (!%p28_p0, %s30_s30), %s2820_s27 }
   0x7   : > { %p268_p3 = pnand %p2233_p1, %p267_p2  ;;  %p32_p4 = scmp.ge.s32.totalorder %s3538_s30, 2 }
   0x8   : > { %s2234_s8 = sshll.u32 (!%p268_p3), %s2808_s24, 4  ;;  %p326_p5 = scmp.lt.s32.totalorder (!%p268_p3), %s2812_s25, 1 }
   0x9   : > { %s3540_s30 = smov (%p32_p4, %s3538_s30), 0  ;;  %271 = sbr.rel (%p268_p3) target bundleno = 1326 (0x52e), region = 40 }
   0xa   : > { %p328_p6 = scmp.lt.s32.totalorder (!%p268_p3), %s2234_s8, 31  ;;  %s2826_s12 = smov (!%p268_p3), 96  }
   0xb   : > { %s2828_s19 = smov (!%p268_p3), 64  }
   0xe   : > { %s3542_s25 = smov (!%p326_p5, %s2812_s25), 1  ;;  %s3544_s8 = smov (!%p328_p6, %s2234_s8), 31  ;;  %vm382_vm0 = vcmask 261120   ;;  %vm1055_vm1 = vcmask 1043456   ;;  %vm1006_vm2 = vcmask 31744   ;;  %vm1284_vm3 = vcmask 257024  }
   0xf   : > { %s2235_s9 = sshll.u32 %s3542_s25, 5 }
  0x10   : > { %s2899_s10 = sadd.s32 %s2235_s9, %s3544_s8 }
  0x11   : > { %s2236_s11 = sshll.u32 %s2899_s10, 3  ;;  %s3280_s15 = sshll.u32 %s2899_s10, 2 }
  0x12   : > { %s2905_s14 = scalar_lea.vmem %s3523_s0, %s2236_s11  ;;  %s3287_s18 = scalar_lea.vmem %s3528_s5, %s3280_s15 }
  0x13   : > { %v366_v0 = vld [vmem:[%s2905_s14] sm:$0xff]  ;;  %v368_v1 = vld [vmem:[%s2905_s14 + $0x10] sm:$0xff]  ;;  %v367_v2 = vld [vmem:[%s2905_s14 + $0x8] sm:$0xff]  ;;  %s2827_s10 = smov 32   ;;  %s3426_s22 = scalar_lea.vmem %s3530_s7, %s3280_s15 }
  0x14   : > { %v383_v3 = vsel %vm382_vm0, %v366_v0, 0.0  ;;  %v389_v4 = vsel %vm382_vm0, %v368_v1, 0.0  ;;  %v369_v5 = vld [vmem:[%s2905_s14 + $0x18] sm:$0xff]  ;;  %v386_v6 = vsel %vm382_vm0, %v367_v2, 0.0  ;;  %v370_v8 = vld [vmem:[%s2905_s14 + $0x20] sm:$0xff]  ;;  %v371_v9 = vld [vmem:[%s2905_s14 + $0x28] sm:$0xff]  ;;  %s3470_s25 = scalar_lea.vmem %s3529_s6, %s3280_s15 }
  0x15   : > { %384 = vadd.xlane.f32.xlu0 %v383_v3  ;;  %390 = vadd.xlane.f32.xlu1 %v389_v4  ;;  %v392_v7 = vsel %vm382_vm0, %v369_v5, 0.0  ;;  %v395_v10 = vsel %vm382_vm0, %v370_v8, 0.0  ;;  %v398_v11 = vsel %vm382_vm0, %v371_v9, 0.0  ;;  %v2920_v12 = vld [vmem:[%s2905_s14 + $0x30] sm:$0xff]  ;;  %v2923_v13 = vld [vmem:[%s2905_s14 + $0x38] sm:$0xff]  ;;  %v2930_v16 = vld [vmem:[%s2905_s14 + $0x40] sm:$0xff] }
  0x16   : > { %v401_v14 = vsel %vm382_vm0, %v2920_v12, 0.0  ;;  %v404_v15 = vsel %vm382_vm0, %v2923_v13, 0.0  ;;  %v2933_v17 = vld [vmem:[%s2905_s14 + $0x48] sm:$0xff]  ;;  %v407_v18 = vsel %vm382_vm0, %v2930_v16, 0.0  ;;  %v2940_v20 = vld [vmem:[%s2905_s14 + $0x50] sm:$0xff]  ;;  %v2943_v21 = vld [vmem:[%s2905_s14 + $0x58] sm:$0xff] }
  0x17   : > { %v410_v19 = vsel %vm382_vm0, %v2933_v17, 0.0  ;;  %v413_v22 = vsel %vm382_vm0, %v2940_v20, 0.0  ;;  %v416_v23 = vsel %vm382_vm0, %v2943_v21, 0.0  ;;  %v2950_v24 = vld [vmem:[%s2905_s14 + $0x60] sm:$0xff]  ;;  %v2953_v25 = vld [vmem:[%s2905_s14 + $0x68] sm:$0xff]  ;;  %v2960_v28 = vld [vmem:[%s2905_s14 + $0x70] sm:$0xff] }
  0x18   : > { %v419_v26 = vsel %vm382_vm0, %v2950_v24, 0.0  ;;  %v422_v27 = vsel %vm382_vm0, %v2953_v25, 0.0  ;;  %v2963_v29 = vld [vmem:[%s2905_s14 + $0x78] sm:$0xff]  ;;  %v425_v30 = vsel %vm382_vm0, %v2960_v28, 0.0 }
  0x19   : > { %387 = vadd.xlane.f32.xlu0 %v386_v6  ;;  %393 = vadd.xlane.f32.xlu1 %v392_v7  ;;  %v428_v31 = vsel %vm382_vm0, %v2963_v29, 0.0 }
  0x1d   : > { %396 = vadd.xlane.f32.xlu0 %v395_v10  ;;  %399 = vadd.xlane.f32.xlu1 %v398_v11 }
  0x21   : > { %402 = vadd.xlane.f32.xlu0 %v401_v14  ;;  %405 = vadd.xlane.f32.xlu1 %v404_v15 }
  0x25   : > { %408 = vadd.xlane.f32.xlu0 %v407_v18  ;;  %411 = vadd.xlane.f32.xlu1 %v410_v19 }
  0x29   : > { %414 = vadd.xlane.f32.xlu0 %v413_v22  ;;  %417 = vadd.xlane.f32.xlu1 %v416_v23 }
  0x2d   : > { %420 = vadd.xlane.f32.xlu0 %v419_v26  ;;  %423 = vadd.xlane.f32.xlu1 %v422_v27 }
  0x31   : > { %426 = vadd.xlane.f32.xlu0 %v425_v30  ;;  %429 = vadd.xlane.f32.xlu1 %v428_v31 }
  0x9e   : > { %v385_v32 = vpop.xlane.xlu0 %384  ;;  %v391_v33 = vpop.xlane.xlu1 %390 }
  0x9f   : > { %v432_v34 = vmul.f32 0.03125, %v385_v32  ;;  %v434_v35 = vmul.f32 0.03125, %v391_v33 }
  0xa1   : > { %v2969_v36 = vsub.f32 %v366_v0, %v432_v34  ;;  %v2971_v37 = vsub.f32 %v368_v1, %v434_v35 }
  0xa2   : > { %v388_v38 = vpop.xlane.xlu0 %387  ;;  %v394_v39 = vpop.xlane.xlu1 %393 }
  0xa3   : > { %v433_v40 = vmul.f32 0.03125, %v388_v38  ;;  %v435_v41 = vmul.f32 0.03125, %v394_v39  ;;  %v464_v42 = vmul.f32 %v2969_v36, %v2969_v36  ;;  %v466_v43 = vmul.f32 %v2971_v37, %v2971_v37 }
  0xa5   : > { %v2977_v44 = vsub.f32 %v367_v2, %v433_v40  ;;  %v2979_v45 = vsub.f32 %v369_v5, %v435_v41  ;;  %v480_v46 = vsel %vm382_vm0, %v464_v42, 0.0  ;;  %v486_v49 = vsel %vm382_vm0, %v466_v43, 0.0 }
  0xa6   : > { %481 = vadd.xlane.f32.xlu0 %v480_v46  ;;  %v397_v47 = vpop.xlane.xlu0 %396  ;;  %v400_v48 = vpop.xlane.xlu1 %399 }
  0xa7   : > { %v436_v50 = vmul.f32 0.03125, %v397_v47  ;;  %v437_v51 = vmul.f32 0.03125, %v400_v48  ;;  %v465_v52 = vmul.f32 %v2977_v44, %v2977_v44  ;;  %v467_v53 = vmul.f32 %v2979_v45, %v2979_v45 }
  0xa9   : > { %v2987_v54 = vsub.f32 %v370_v8, %v436_v50  ;;  %v2989_v55 = vsub.f32 %v371_v9, %v437_v51  ;;  %v483_v56 = vsel %vm382_vm0, %v465_v52, 0.0  ;;  %v489_v59 = vsel %vm382_vm0, %v467_v53, 0.0  ;;  %v2689_v53 = vld [vmem:[%s3524_s1] sm:$0xff]  }
  0xaa   : > { %487 = vadd.xlane.f32.xlu0 %v486_v49  ;;  %484 = vadd.xlane.f32.xlu1 %v483_v56  ;;  %v403_v57 = vpop.xlane.xlu0 %402  ;;  %v406_v58 = vpop.xlane.xlu1 %405 }
  0xab   : > { %v438_v60 = vmul.f32 0.03125, %v403_v57  ;;  %v439_v61 = vmul.f32 0.03125, %v406_v58  ;;  %v468_v62 = vmul.f32 %v2987_v54, %v2987_v54  ;;  %v469_v63 = vmul.f32 %v2989_v55, %v2989_v55 }
  0xad   : > { %v2998_v0 = vsub.f32 %v2920_v12, %v438_v60  ;;  %v3001_v1 = vsub.f32 %v2923_v13, %v439_v61  ;;  %v492_v2 = vsel %vm382_vm0, %v468_v62, 0.0  ;;  %v495_v5 = vsel %vm382_vm0, %v469_v63, 0.0 }
  0xae   : > { %490 = vadd.xlane.f32.xlu1 %v489_v59  ;;  %493 = vadd.xlane.f32.xlu0 %v492_v2  ;;  %v409_v3 = vpop.xlane.xlu0 %408  ;;  %v412_v4 = vpop.xlane.xlu1 %411 }
  0xaf   : > { %v440_v6 = vmul.f32 0.03125, %v409_v3  ;;  %v441_v7 = vmul.f32 0.03125, %v412_v4  ;;  %v470_v8 = vmul.f32 %v2998_v0, %v2998_v0  ;;  %v471_v9 = vmul.f32 %v3001_v1, %v3001_v1 }
  0xb1   : > { %v3010_v10 = vsub.f32 %v2930_v16, %v440_v6  ;;  %v3013_v11 = vsub.f32 %v2933_v17, %v441_v7  ;;  %v498_v12 = vsel %vm382_vm0, %v470_v8, 0.0  ;;  %v501_v15 = vsel %vm382_vm0, %v471_v9, 0.0 }
  0xb2   : > { %496 = vadd.xlane.f32.xlu1 %v495_v5  ;;  %499 = vadd.xlane.f32.xlu0 %v498_v12  ;;  %v415_v13 = vpop.xlane.xlu0 %414  ;;  %v418_v14 = vpop.xlane.xlu1 %417 }
  0xb3   : > { %v442_v18 = vmul.f32 0.03125, %v415_v13  ;;  %v443_v19 = vmul.f32 0.03125, %v418_v14  ;;  %v472_v22 = vmul.f32 %v3010_v10, %v3010_v10  ;;  %v473_v16 = vmul.f32 %v3013_v11, %v3013_v11 }
  0xb5   : > { %v3022_v23 = vsub.f32 %v2940_v20, %v442_v18  ;;  %v3025_v17 = vsub.f32 %v2943_v21, %v443_v19  ;;  %v504_v26 = vsel %vm382_vm0, %v472_v22, 0.0  ;;  %v507_v31 = vsel %vm382_vm0, %v473_v16, 0.0 }
  0xb6   : > { %502 = vadd.xlane.f32.xlu1 %v501_v15  ;;  %505 = vadd.xlane.f32.xlu0 %v504_v26  ;;  %v421_v27 = vpop.xlane.xlu0 %420  ;;  %v424_v30 = vpop.xlane.xlu1 %423 }
  0xb7   : > { %v444_v32 = vmul.f32 0.03125, %v421_v27  ;;  %v445_v33 = vmul.f32 0.03125, %v424_v30  ;;  %v474_v34 = vmul.f32 %v3022_v23, %v3022_v23  ;;  %v475_v20 = vmul.f32 %v3025_v17, %v3025_v17 }
  0xb9   : > { %v3034_v35 = vsub.f32 %v2950_v24, %v444_v32  ;;  %v3037_v21 = vsub.f32 %v2953_v25, %v445_v33  ;;  %v510_v38 = vsel %vm382_vm0, %v474_v34, 0.0  ;;  %v513_v41 = vsel %vm382_vm0, %v475_v20, 0.0 }
  0xba   : > { %508 = vadd.xlane.f32.xlu1 %v507_v31  ;;  %511 = vadd.xlane.f32.xlu0 %v510_v38  ;;  %v427_v39 = vpop.xlane.xlu0 %426  ;;  %v430_v40 = vpop.xlane.xlu1 %429 }
  0xbb   : > { %v446_v42 = vmul.f32 0.03125, %v427_v39  ;;  %v447_v43 = vmul.f32 0.03125, %v430_v40  ;;  %v476_v46 = vmul.f32 %v3034_v35, %v3034_v35  ;;  %v477_v24 = vmul.f32 %v3037_v21, %v3037_v21 }
  0xbd   : > { %v3046_v47 = vsub.f32 %v2960_v28, %v446_v42  ;;  %v3049_v25 = vsub.f32 %v2963_v29, %v447_v43  ;;  %v516_v48 = vsel %vm382_vm0, %v476_v46, 0.0  ;;  %v519_v49 = vsel %vm382_vm0, %v477_v24, 0.0  ;;  %v2688_v29 = vld [vmem:[%s3524_s1 + $0x8] sm:$0xff]  }
  0xbe   : > { %514 = vadd.xlane.f32.xlu1 %v513_v41  ;;  %517 = vadd.xlane.f32.xlu0 %v516_v48 }
  0xbf   : > { %v478_v50 = vmul.f32 %v3046_v47, %v3046_v47  ;;  %v479_v51 = vmul.f32 %v3049_v25, %v3049_v25  ;;  %2505 = vmatprep.subr.bf16.mxu0 %v2688_v29  ;;  %2641 = vmatprep.subr.bf16.mxu1 %v2688_v29 }
  0xc0   : > { %2506 = vmatpush3.bf16.msra.mxu0 %v2688_v29  ;;  %2643 = vmatpush3.bf16.msra.mxu1 %v2688_v29 }
  0xc1   : > { %v522_v52 = vsel %vm382_vm0, %v478_v50, 0.0  ;;  %v525_v28 = vsel %vm382_vm0, %v479_v51, 0.0  ;;  %2507 = vmatprep.subr.bf16.mxu0 %v2689_v53  ;;  %2642 = vmatprep.subr.bf16.mxu1 %v2689_v53 }
  0xc2   : > { %520 = vadd.xlane.f32.xlu1 %v519_v49  ;;  %523 = vadd.xlane.f32.xlu0 %v522_v52 }
  0xc4   : > { %2508 = vmatpush3.bf16.msra.mxu0 %v2689_v53  ;;  %2644 = vmatpush3.bf16.msra.mxu1 %v2689_v53 }
  0xc6   : > { %526 = vadd.xlane.f32.xlu1 %v525_v28 }
 0x12f   : > { %v482_v56 = vpop.xlane.xlu0 %481 }
 0x130   : > { %v528_v57 = vmul.f32 0.03125, %v482_v56 }
 0x132   : > { %v544_v58 = vadd.f32 1e-05, %v528_v57 }
 0x133   : > { %v485_v59 = vpop.xlane.xlu1 %484  ;;  %v488_v60 = vpop.xlane.xlu0 %487 }
 0x134   : > { %v529_v61 = vmul.f32 0.03125, %v485_v59  ;;  %v530_v62 = vmul.f32 0.03125, %v488_v60  ;;  %2690 = vrsqrt.f32 %v544_v58 }
 0x136   : > { %v545_v63 = vadd.f32 1e-05, %v529_v61  ;;  %v546_v2 = vadd.f32 1e-05, %v530_v62 }
 0x137   : > { %v491_v3 = vpop.xlane.xlu1 %490  ;;  %v494_v4 = vpop.xlane.xlu0 %493 }
 0x138   : > { %2692 = vrsqrt.f32 %v545_v63  ;;  %v531_v5 = vmul.f32 0.03125, %v491_v3  ;;  %v532_v6 = vmul.f32 0.03125, %v494_v4 }
 0x139   : > { %2694 = vrsqrt.f32 %v546_v2 }
 0x13a   : > { %v547_v7 = vadd.f32 1e-05, %v531_v5  ;;  %v548_v8 = vadd.f32 1e-05, %v532_v6 }
 0x13b   : > { %v497_v9 = vpop.xlane.xlu1 %496  ;;  %v500_v12 = vpop.xlane.xlu0 %499 }
 0x13c   : > { %2696 = vrsqrt.f32 %v547_v7  ;;  %v533_v13 = vmul.f32 0.03125, %v497_v9  ;;  %v534_v14 = vmul.f32 0.03125, %v500_v12 }
 0x13d   : > { %2698 = vrsqrt.f32 %v548_v8 }
 0x13e   : > { %v549_v15 = vadd.f32 1e-05, %v533_v13  ;;  %v550_v18 = vadd.f32 1e-05, %v534_v14 }
 0x13f   : > { %v503_v19 = vpop.xlane.xlu1 %502  ;;  %v506_v22 = vpop.xlane.xlu0 %505 }
 0x140   : > { %2700 = vrsqrt.f32 %v549_v15  ;;  %v535_v16 = vmul.f32 0.03125, %v503_v19  ;;  %v536_v26 = vmul.f32 0.03125, %v506_v22 }
 0x141   : > { %v2691_v27 = vpop.eup %2690  ;;  %2702 = vrsqrt.f32 %v550_v18 }
 0x142   : > { %v551_v30 = vadd.f32 1e-05, %v535_v16  ;;  %v552_v31 = vadd.f32 1e-05, %v536_v26  ;;  %v576_v39 = vmul.f32 %v2691_v27, %v2969_v36 }
 0x143   : > { %v509_v32 = vpop.xlane.xlu1 %508  ;;  %v512_v33 = vpop.xlane.xlu0 %511 }
 0x144   : > { %2704 = vrsqrt.f32 %v551_v30  ;;  %v537_v34 = vmul.f32 0.03125, %v509_v32  ;;  %v538_v20 = vmul.f32 0.03125, %v512_v33 }
 0x145   : > { %v2693_v38 = vpop.eup %2692  ;;  %2706 = vrsqrt.f32 %v552_v31 }
 0x146   : > { %v2695_v40 = vpop.eup %2694  ;;  %v553_v41 = vadd.f32 1e-05, %v537_v34  ;;  %v554_v42 = vadd.f32 1e-05, %v538_v20  ;;  %v577_v43 = vmul.f32 %v2693_v38, %v2977_v44 }
 0x147   : > { %v515_v46 = vpop.xlane.xlu1 %514  ;;  %v518_v24 = vpop.xlane.xlu0 %517  ;;  %v578_v52 = vmul.f32 %v2695_v40, %v2971_v37 }
 0x148   : > { %2708 = vrsqrt.f32 %v553_v41  ;;  %v539_v48 = vmul.f32 0.03125, %v515_v46  ;;  %v540_v49 = vmul.f32 0.03125, %v518_v24  ;;  %v592_v50 = vpack.c.bf16 %v577_v43, %v576_v39 }
 0x149   : > { %v2697_v51 = vpop.eup %2696  ;;  %2710 = vrsqrt.f32 %v554_v42 }
 0x14a   : > { %v2699_v28 = vpop.eup %2698  ;;  %v555_v29 = vadd.f32 1e-05, %v539_v48  ;;  %v556_v53 = vadd.f32 1e-05, %v540_v49  ;;  %2509 = vmatprep.mubr.msk.bf16.mxu0 %vm382_vm0, %v592_v50  ;;  %v579_v36 = vmul.f32 %v2697_v51, %v2979_v45 }
 0x14b   : > { %v521_v56 = vpop.xlane.xlu1 %520  ;;  %v524_v57 = vpop.xlane.xlu0 %523  ;;  %v580_v61 = vmul.f32 %v2699_v28, %v2987_v54 }
 0x14c   : > { %2712 = vrsqrt.f32 %v555_v29  ;;  %v541_v44 = vmul.f32 0.03125, %v521_v56  ;;  %v542_v58 = vmul.f32 0.03125, %v524_v57  ;;  %v593_v59 = vpack.c.bf16 %v579_v36, %v578_v52 }
 0x14d   : > { %v2701_v60 = vpop.eup %2700  ;;  %2714 = vrsqrt.f32 %v556_v53 }
 0x14e   : > { %v557_v62 = vadd.f32 1e-05, %v541_v44  ;;  %v558_v37 = vadd.f32 1e-05, %v542_v58  ;;  %2510 = vmatmul.mubr.msk.bf16.vlgmr.msra.gmra.mxu0 %vm382_vm0, %v593_v59  ;;  %v581_v63 = vmul.f32 %v2701_v60, %v2989_v55  ;;  %v2703_v2 = vpop.eup %2702 }
 0x14f   : > { %v527_v3 = vpop.xlane.xlu1 %526  ;;  %v582_v7 = vmul.f32 %v2703_v2, %v2998_v0 }
 0x150   : > { %2716 = vrsqrt.f32 %v557_v62  ;;  %v543_v45 = vmul.f32 0.03125, %v527_v3  ;;  %v594_v4 = vpack.c.bf16 %v581_v63, %v580_v61 }
 0x151   : > { %v2705_v5 = vpop.eup %2704  ;;  %2718 = vrsqrt.f32 %v558_v37 }
 0x152   : > { %v559_v6 = vadd.f32 1e-05, %v543_v45  ;;  %2513 = vmatprep.mubr.msk.bf16.mxu0 %vm382_vm0, %v594_v4  ;;  %v583_v54 = vmul.f32 %v2705_v5, %v3001_v1  ;;  %v2707_v8 = vpop.eup %2706 }
 0x153   : > { %v584_v55 = vmul.f32 %v2707_v8, %v3010_v10 }
 0x154   : > { %2720 = vrsqrt.f32 %v559_v6  ;;  %v595_v9 = vpack.c.bf16 %v583_v54, %v582_v7 }
 0x155   : > { %v2709_v12 = vpop.eup %2708 }
 0x156   : > { %2514 = vmatmul.mubr.msk.bf16.gmra.mxu0 %vm382_vm0, %v595_v9  ;;  %v585_v13 = vmul.f32 %v2709_v12, %v3013_v11  ;;  %v2711_v14 = vpop.eup %2710 }
 0x157   : > { %v586_v19 = vmul.f32 %v2711_v14, %v3022_v23 }
 0x158   : > { %v596_v15 = vpack.c.bf16 %v585_v13, %v584_v55 }
 0x159   : > { %v2713_v18 = vpop.eup %2712 }
 0x15a   : > { %2517 = vmatprep.mubr.msk.bf16.mxu1 %vm382_vm0, %v596_v15  ;;  %v587_v0 = vmul.f32 %v2713_v18, %v3025_v17  ;;  %v2715_v1 = vpop.eup %2714  ;;  %v747_v17 = vld [vmem:[%s3526_s3 + $0x18] sm:$0xff] }
 0x15b   : > { %v588_v26 = vmul.f32 %v2715_v1, %v3034_v35  ;;  %2525 = vmatprep.subr.mxu1 %v747_v17  ;;  %v746_v35 = vld [vmem:[%s3526_s3 + $0x10] sm:$0xff]  ;;  %v3221_v1 = vld [vmem:[%s3527_s4] sm:$0xf] }
 0x15c   : > { %v597_v22 = vpack.c.bf16 %v587_v0, %v586_v19  ;;  %2557 = vmatprep.subr.msk.mxu0 %vm1055_vm1, %v3221_v1 }
 0x15d   : > { %v2717_v16 = vpop.eup %2716  ;;  %2558 = vmatpush3.msk.msra.mxu0 %vm1055_vm1, %v3221_v1 }
 0x15e   : > { %2518 = vmatmul.mubr.msk.bf16.vlgmr.msra.gmra.mxu1 %vm382_vm0, %v597_v22  ;;  %v589_v10 = vmul.f32 %v2717_v16, %v3037_v21  ;;  %v2719_v27 = vpop.eup %2718  ;;  %v745_v21 = vld [vmem:[%s3526_s3 + $0x8] sm:$0xff]  ;;  %2615 = vmatprep.subr.msk.mxu0 %vm1055_vm1, %v3221_v1 }
 0x15f   : > { %v590_v31 = vmul.f32 %v2719_v27, %v3046_v47  ;;  %2526 = vmatpush3.msra.mxu1 %v747_v17  ;;  %v744_v47 = vld [vmem:[%s3526_s3] sm:$0xff] }
 0x160   : > { %v598_v11 = vpack.c.bf16 %v589_v10, %v588_v26  ;;  %2527 = vmatprep.subr.mxu1 %v746_v35 }
 0x161   : > { %v2721_v30 = vpop.eup %2720  ;;  %2528 = vmatpush3.msra.mxu1 %v746_v35 }
 0x162   : > { %2521 = vmatprep.mubr.msk.bf16.mxu1 %vm382_vm0, %v598_v11  ;;  %v591_v23 = vmul.f32 %v2721_v30, %v3049_v25  ;;  %2529 = vmatprep.subr.mxu1 %v745_v21  ;;  %v3104_v25 = vld [vmem:[%s3525_s2] ss:$0 sm:$0xff] }
 0x163   : > { %2530 = vmatpush3.msra.mxu1 %v745_v21 }
 0x164   : > { %v599_v32 = vpack.c.bf16 %v591_v23, %v590_v31  ;;  %2531 = vmatprep.subr.mxu1 %v744_v47 }
 0x165   : > { %2532 = vmatpush3.msra.mxu1 %v744_v47 }
 0x166   : > { %2522 = vmatmul.mubr.msk.bf16.gmra.mxu1 %vm382_vm0, %v599_v32  ;;  %2583 = vmatprep.subr.mxu1 %v747_v17 }
 0x20e   : > { %v2511_v33 = vpop.f32.mrf.mxu0 }
 0x20f   : > { %v3107_v34 = vadd.f32 %v2511_v33, %v3104_v25 }
 0x210   : > { %v681_v20 = vpop.f32.mrf.mxu0 }
 0x211   : > { %v3110_v38 = vadd.f32 %v3104_v25, %v681_v20  ;;  %v751_v39 = vmul.f32 %v3107_v34, %v3107_v34 }
 0x212   : > { %v2512_v40 = vpop.f32.mrf.mxu0 }
 0x213   : > { %1305 = vrot.lane.b32.xlu1 %v751_v39, %s2826_s12  ;;  %v749_v41 = vmul.f32 %v3110_v38, %v3110_v38  ;;  %v3123_v24 = vadd.f32 %v2512_v40, %v3104_v25 }
 0x214   : > { %v684_v42 = vpop.f32.mrf.mxu0 }
 0x215   : > { %v3118_v43 = vadd.f32 %v3104_v25, %v684_v42  ;;  %1301 = vrot.lane.b32.xlu0 %v749_v41, %s2826_s12  ;;  %2533 = vmatprep.mubr.msk.f32.mxu1 %vm382_vm0, %v749_v41  ;;  %v752_v28 = vmul.f32 %v3123_v24, %v3123_v24 }
 0x216   : > { %v2515_v46 = vpop.f32.mrf.mxu0 }
 0x217   : > { %v750_v48 = vmul.f32 %v3118_v43, %v3118_v43  ;;  %v3134_v52 = vadd.f32 %v2515_v46, %v3104_v25 }
 0x218   : > { %v697_v49 = vpop.f32.mrf.mxu0 }
 0x219   : > { %v3128_v50 = vadd.f32 %v3104_v25, %v697_v49  ;;  %1303 = vrot.lane.b32.xlu1 %v750_v48, %s2826_s12  ;;  %2534 = vmatmul.mubr.msk.f32.vlgmr.msra.gmra.mxu1 %vm382_vm0, %v750_v48  ;;  %v755_v58 = vmul.f32 %v3134_v52, %v3134_v52 }
 0x21a   : > { %v2516_v51 = vpop.f32.mrf.mxu0  ;;  %2536 = vmatprep.mubr.msk.f32.mxu1 %vm382_vm0, %v751_v39  ;;  %2584 = vmatpush3.msra.mxu1 %v747_v17 }
 0x21b   : > { %v753_v29 = vmul.f32 %v3128_v50, %v3128_v50  ;;  %2585 = vmatprep.subr.mxu1 %v746_v35  ;;  %v3147_v57 = vadd.f32 %v2516_v51, %v3104_v25 }
 0x21c   : > { %v700_v53 = vpop.f32.mrf.mxu0  ;;  %2586 = vmatpush3.msra.mxu1 %v746_v35 }
 0x21d   : > { %v3141_v36 = vadd.f32 %v3104_v25, %v700_v53  ;;  %1307 = vrot.lane.b32.xlu1 %v752_v28, %s2826_s12  ;;  %1309 = vrot.lane.b32.xlu0 %v753_v29, %s2826_s12  ;;  %v756_v37 = vmul.f32 %v3147_v57, %v3147_v57 }
 0x21e   : > { %2537 = vmatmul.mubr.msk.f32.gmra.mxu1 %vm382_vm0, %v752_v28  ;;  %v2519_v56 = vpop.f32.mrf.mxu1  ;;  %2587 = vmatprep.subr.mxu1 %v745_v21 }
 0x21f   : > { %2539 = vmatprep.mubr.msk.f32.mxu1 %vm382_vm0, %v753_v29  ;;  %v754_v44 = vmul.f32 %v3141_v36, %v3141_v36  ;;  %2588 = vmatpush3.msra.mxu1 %v745_v21  ;;  %v3161_v62 = vadd.f32 %v2519_v56, %v3104_v25 }
 0x220   : > { %v713_v59 = vpop.f32.mrf.mxu1  ;;  %2589 = vmatprep.subr.mxu1 %v744_v47 }
 0x221   : > { %v3155_v60 = vadd.f32 %v3104_v25, %v713_v59  ;;  %1311 = vrot.lane.b32.xlu1 %v754_v44, %s2826_s12  ;;  %1313 = vrot.lane.b32.xlu0 %v755_v58, %s2826_s12  ;;  %v759_v6 = vmul.f32 %v3161_v62, %v3161_v62 }
 0x222   : > { %2540 = vmatmul.mubr.msk.f32.gmra.mxu1 %vm382_vm0, %v754_v44  ;;  %v2520_v61 = vpop.f32.mrf.mxu1 }
 0x223   : > { %2542 = vmatprep.mubr.msk.f32.mxu1 %vm382_vm0, %v755_v58  ;;  %v757_v63 = vmul.f32 %v3155_v60, %v3155_v60  ;;  %2590 = vmatpush3.msra.mxu1 %v744_v47  ;;  %v3175_v4 = vadd.f32 %v2520_v61, %v3104_v25 }
 0x224   : > { %v716_v2 = vpop.f32.mrf.mxu1 }
 0x225   : > { %v3169_v3 = vadd.f32 %v3104_v25, %v716_v2  ;;  %1315 = vrot.lane.b32.xlu1 %v756_v37, %s2826_s12  ;;  %1317 = vrot.lane.b32.xlu0 %v757_v63, %s2826_s12  ;;  %v760_v12 = vmul.f32 %v3175_v4, %v3175_v4 }
 0x226   : > { %2543 = vmatmul.mubr.msk.f32.gmra.mxu1 %vm382_vm0, %v756_v37  ;;  %v2523_v45 = vpop.f32.mrf.mxu1 }
 0x227   : > { %2545 = vmatprep.mubr.msk.f32.mxu1 %vm382_vm0, %v757_v63  ;;  %v758_v5 = vmul.f32 %v3169_v3, %v3169_v3  ;;  %v3189_v9 = vadd.f32 %v2523_v45, %v3104_v25 }
 0x228   : > { %v729_v7 = vpop.f32.mrf.mxu1 }
 0x229   : > { %v3183_v54 = vadd.f32 %v3104_v25, %v729_v7  ;;  %1319 = vrot.lane.b32.xlu1 %v758_v5, %s2826_s12  ;;  %1321 = vrot.lane.b32.xlu0 %v759_v6, %s2826_s12  ;;  %v763_v19 = vmul.f32 %v3189_v9, %v3189_v9 }
 0x22a   : > { %2546 = vmatmul.mubr.msk.f32.gmra.mxu1 %vm382_vm0, %v758_v5  ;;  %v2524_v8 = vpop.f32.mrf.mxu1 }
 0x22b   : > { %2548 = vmatprep.mubr.msk.f32.mxu1 %vm382_vm0, %v759_v6  ;;  %v761_v55 = vmul.f32 %v3183_v54, %v3183_v54  ;;  %v3203_v15 = vadd.f32 %v2524_v8, %v3104_v25 }
 0x22c   : > { %v732_v13 = vpop.f32.mrf.mxu1 }
 0x22d   : > { %v3197_v14 = vadd.f32 %v3104_v25, %v732_v13  ;;  %1323 = vrot.lane.b32.xlu1 %v760_v12, %s2826_s12  ;;  %1325 = vrot.lane.b32.xlu0 %v761_v55, %s2826_s12  ;;  %v764_v0 = vmul.f32 %v3203_v15, %v3203_v15 }
 0x22e   : > { %2549 = vmatmul.mubr.msk.f32.gmra.mxu1 %vm382_vm0, %v760_v12 }
 0x22f   : > { %2551 = vmatprep.mubr.msk.f32.mxu1 %vm382_vm0, %v761_v55  ;;  %v762_v18 = vmul.f32 %v3197_v14, %v3197_v14 }
 0x231   : > { %1327 = vrot.lane.b32.xlu1 %v762_v18, %s2826_s12  ;;  %1329 = vrot.lane.b32.xlu0 %v763_v19, %s2826_s12 }
 0x232   : > { %2552 = vmatmul.mubr.msk.f32.gmra.mxu1 %vm382_vm0, %v762_v18 }
 0x233   : > { %2554 = vmatprep.mubr.msk.f32.mxu1 %vm382_vm0, %v763_v19 }
 0x235   : > { %1331 = vrot.lane.b32.xlu1 %v764_v0, %s2826_s12 }
 0x236   : > { %2555 = vmatmul.mubr.msk.f32.gmra.mxu1 %vm382_vm0, %v764_v0 }
 0x285   : > { %v1306_v22 = vpop.permute.xlu1 %1305 }
 0x287   : > { %v1302_v16 = vpop.permute.xlu0 %1301 }
 0x288   : > { %2591 = vmatprep.mubr.msk.f32.mxu1 %vm382_vm0, %v1302_v16 }
 0x28b   : > { %v1304_v26 = vpop.permute.xlu1 %1303 }
 0x28c   : > { %2592 = vmatmul.mubr.msk.f32.vlgmr.msra.gmra.mxu1 %vm382_vm0, %v1304_v26 }
 0x28d   : > { %2594 = vmatprep.mubr.msk.f32.mxu1 %vm382_vm0, %v1306_v22 }
 0x28f   : > { %v1308_v10 = vpop.permute.xlu1 %1307  ;;  %v1310_v27 = vpop.permute.xlu0 %1309 }
 0x290   : > { %2595 = vmatmul.mubr.msk.f32.gmra.mxu1 %vm382_vm0, %v1308_v10 }
 0x291   : > { %2597 = vmatprep.mubr.msk.f32.mxu1 %vm382_vm0, %v1310_v27 }
 0x293   : > { %v1312_v11 = vpop.permute.xlu1 %1311  ;;  %v1314_v30 = vpop.permute.xlu0 %1313 }
 0x294   : > { %2598 = vmatmul.mubr.msk.f32.gmra.mxu1 %vm382_vm0, %v1312_v11 }
 0x295   : > { %2600 = vmatprep.mubr.msk.f32.mxu1 %vm382_vm0, %v1314_v30 }
 0x297   : > { %v1316_v31 = vpop.permute.xlu1 %1315  ;;  %v1318_v23 = vpop.permute.xlu0 %1317 }
 0x298   : > { %2601 = vmatmul.mubr.msk.f32.gmra.mxu1 %vm382_vm0, %v1316_v31 }
 0x299   : > { %2603 = vmatprep.mubr.msk.f32.mxu1 %vm382_vm0, %v1318_v23 }
 0x29b   : > { %v1320_v32 = vpop.permute.xlu1 %1319  ;;  %v1322_v17 = vpop.permute.xlu0 %1321 }
 0x29c   : > { %2604 = vmatmul.mubr.msk.f32.gmra.mxu1 %vm382_vm0, %v1320_v32 }
 0x29d   : > { %2606 = vmatprep.mubr.msk.f32.mxu1 %vm382_vm0, %v1322_v17 }
 0x29f   : > { %v1324_v35 = vpop.permute.xlu1 %1323  ;;  %v1326_v21 = vpop.permute.xlu0 %1325 }
 0x2a0   : > { %2607 = vmatmul.mubr.msk.f32.gmra.mxu1 %vm382_vm0, %v1324_v35 }
 0x2a1   : > { %2609 = vmatprep.mubr.msk.f32.mxu1 %vm382_vm0, %v1326_v21 }
 0x2a3   : > { %v1328_v47 = vpop.permute.xlu1 %1327  ;;  %v1330_v25 = vpop.permute.xlu0 %1329 }
 0x2a4   : > { %2610 = vmatmul.mubr.msk.f32.gmra.mxu1 %vm382_vm0, %v1328_v47 }
 0x2a5   : > { %2612 = vmatprep.mubr.msk.f32.mxu1 %vm382_vm0, %v1330_v25 }
 0x2a7   : > { %v1332_v33 = vpop.permute.xlu1 %1331 }
 0x2a8   : > { %2613 = vmatmul.mubr.msk.f32.gmra.mxu1 %vm382_vm0, %v1332_v33 }
 0x2d9   : > { %v2535_v20 = vpop.f32.mrf.mxu1 }
 0x2da   : > { %v959_v39 = vmax.f32 %v2535_v20, 1e-24 }
 0x2db   : > { %v879_v40 = vpop.f32.mrf.mxu1 }
 0x2dc   : > { %v958_v41 = vmax.f32 %v879_v40, 1e-24  ;;  %2722 = vrsqrt.f32 %v959_v39 }
 0x2de   : > { %2724 = vrsqrt.f32 %v958_v41  ;;  %v2538_v42 = vpop.f32.mrf.mxu1 }
 0x2df   : > { %v961_v46 = vmax.f32 %v2538_v42, 1e-24 }
 0x2e0   : > { %v889_v48 = vpop.f32.mrf.mxu1 }
 0x2e1   : > { %v960_v49 = vmax.f32 %v889_v48, 1e-24  ;;  %2726 = vrsqrt.f32 %v961_v46 }
 0x2e2   : > { %v2541_v51 = vpop.f32.mrf.mxu1 }
 0x2e3   : > { %2728 = vrsqrt.f32 %v960_v49  ;;  %v963_v28 = vmax.f32 %v2541_v51, 1e-24 }
 0x2e4   : > { %v899_v29 = vpop.f32.mrf.mxu1 }
 0x2e5   : > { %v962_v53 = vmax.f32 %v899_v29, 1e-24  ;;  %2730 = vrsqrt.f32 %v963_v28 }
 0x2e6   : > { %v2544_v56 = vpop.f32.mrf.mxu1 }
 0x2e7   : > { %2732 = vrsqrt.f32 %v962_v53  ;;  %v965_v44 = vmax.f32 %v2544_v56, 1e-24 }
 0x2e8   : > { %v909_v58 = vpop.f32.mrf.mxu1 }
 0x2e9   : > { %v964_v59 = vmax.f32 %v909_v58, 1e-24  ;;  %v2723_v61 = vpop.eup %2722  ;;  %2734 = vrsqrt.f32 %v965_v44 }
 0x2ea   : > { %v2547_v37 = vpop.f32.mrf.mxu1  ;;  %v991_v6 = vmul.f32 0.35355338, %v2723_v61 }
 0x2eb   : > { %v2725_v63 = vpop.eup %2724  ;;  %2736 = vrsqrt.f32 %v964_v59  ;;  %v967_v2 = vmax.f32 %v2547_v37, 1e-24 }
 0x2ec   : > { %v990_v45 = vmul.f32 0.35355338, %v2725_v63  ;;  %v919_v5 = vpop.f32.mrf.mxu1 }
 0x2ed   : > { %v966_v7 = vmax.f32 %v919_v5, 1e-24  ;;  %2738 = vrsqrt.f32 %v967_v2 }
 0x2ee   : > { %v2550_v8 = vpop.f32.mrf.mxu1  ;;  %2559 = vmatprep.mubr.msk.f32.mxu0 %vm1006_vm2, %v990_v45  ;;  %v2727_v12 = vpop.eup %2726 }
 0x2ef   : > { %2740 = vrsqrt.f32 %v966_v7  ;;  %v969_v55 = vmax.f32 %v2550_v8, 1e-24  ;;  %2560 = vmatmul.mubr.msk.f32.vlgmr.msra.gmra.mxu0 %vm1006_vm2, %v991_v6  ;;  %v993_v22 = vmul.f32 0.35355338, %v2727_v12 }
 0x2f0   : > { %v2729_v13 = vpop.eup %2728  ;;  %v929_v18 = vpop.f32.mrf.mxu1  ;;  %2616 = vmatpush3.msk.msra.mxu0 %vm1055_vm1, %v3221_v1 }
 0x2f1   : > { %v992_v19 = vmul.f32 0.35355338, %v2729_v13  ;;  %v968_v0 = vmax.f32 %v929_v18, 1e-24  ;;  %2742 = vrsqrt.f32 %v969_v55 }
 0x2f2   : > { %v2553_v16 = vpop.f32.mrf.mxu1  ;;  %v2731_v26 = vpop.eup %2730 }
 0x2f3   : > { %2744 = vrsqrt.f32 %v968_v0  ;;  %v971_v10 = vmax.f32 %v2553_v16, 1e-24  ;;  %2562 = vmatprep.mubr.msk.f32.mxu0 %vm1006_vm2, %v992_v19  ;;  %v995_v23 = vmul.f32 0.35355338, %v2731_v26 }
 0x2f4   : > { %v2733_v27 = vpop.eup %2732  ;;  %v939_v11 = vpop.f32.mrf.mxu1  ;;  %2563 = vmatmul.mubr.msk.f32.gmra.mxu0 %vm1006_vm2, %v993_v22 }
 0x2f5   : > { %v994_v30 = vmul.f32 0.35355338, %v2733_v27  ;;  %v970_v31 = vmax.f32 %v939_v11, 1e-24  ;;  %2746 = vrsqrt.f32 %v971_v10 }
 0x2f6   : > { %v2556_v32 = vpop.f32.mrf.mxu1  ;;  %v2735_v1 = vpop.eup %2734 }
 0x2f7   : > { %2748 = vrsqrt.f32 %v970_v31  ;;  %v973_v17 = vmax.f32 %v2556_v32, 1e-24  ;;  %2565 = vmatprep.mubr.msk.f32.mxu0 %vm1006_vm2, %v994_v30  ;;  %v997_v33 = vmul.f32 0.35355338, %v2735_v1 }
 0x2f8   : > { %v2737_v35 = vpop.eup %2736  ;;  %v949_v21 = vpop.f32.mrf.mxu1  ;;  %2566 = vmatmul.mubr.msk.f32.gmra.mxu0 %vm1006_vm2, %v995_v23 }
 0x2f9   : > { %v996_v47 = vmul.f32 0.35355338, %v2737_v35  ;;  %v972_v25 = vmax.f32 %v949_v21, 1e-24  ;;  %2750 = vrsqrt.f32 %v973_v17 }
 0x2fa   : > { %v2739_v20 = vpop.eup %2738 }
 0x2fb   : > { %2752 = vrsqrt.f32 %v972_v25  ;;  %2568 = vmatprep.mubr.msk.f32.mxu0 %vm1006_vm2, %v996_v47  ;;  %v999_v41 = vmul.f32 0.35355338, %v2739_v20 }
 0x2fc   : > { %v2741_v39 = vpop.eup %2740  ;;  %2569 = vmatmul.mubr.msk.f32.gmra.mxu0 %vm1006_vm2, %v997_v33 }
 0x2fd   : > { %v998_v40 = vmul.f32 0.35355338, %v2741_v39 }
 0x2fe   : > { %v2743_v42 = vpop.eup %2742 }
 0x2ff   : > { %2571 = vmatprep.mubr.msk.f32.mxu0 %vm1006_vm2, %v998_v40  ;;  %v1001_v49 = vmul.f32 0.35355338, %v2743_v42 }
 0x300   : > { %v2745_v46 = vpop.eup %2744  ;;  %2572 = vmatmul.mubr.msk.f32.gmra.mxu0 %vm1006_vm2, %v999_v41 }
 0x301   : > { %v1000_v48 = vmul.f32 0.35355338, %v2745_v46 }
 0x302   : > { %v2747_v51 = vpop.eup %2746 }
 0x303   : > { %2574 = vmatprep.mubr.msk.f32.mxu0 %vm1006_vm2, %v1000_v48  ;;  %v1003_v53 = vmul.f32 0.35355338, %v2747_v51 }
 0x304   : > { %v2749_v28 = vpop.eup %2748  ;;  %2575 = vmatmul.mubr.msk.f32.gmra.mxu0 %vm1006_vm2, %v1001_v49 }
 0x305   : > { %v1002_v29 = vmul.f32 0.35355338, %v2749_v28 }
 0x306   : > { %v2751_v56 = vpop.eup %2750 }
 0x307   : > { %2577 = vmatprep.mubr.msk.f32.mxu0 %vm1006_vm2, %v1002_v29  ;;  %v1005_v59 = vmul.f32 0.35355338, %v2751_v56 }
 0x308   : > { %v2753_v44 = vpop.eup %2752  ;;  %2578 = vmatmul.mubr.msk.f32.gmra.mxu0 %vm1006_vm2, %v1003_v53 }
 0x309   : > { %v1004_v58 = vmul.f32 0.35355338, %v2753_v44 }
 0x30b   : > { %2580 = vmatprep.mubr.msk.f32.mxu0 %vm1006_vm2, %v1004_v58 }
 0x30c   : > { %2581 = vmatmul.mubr.msk.f32.gmra.mxu0 %vm1006_vm2, %v1005_v59 }
 0x34c   : > { %v2593_v61 = vpop.f32.mrf.mxu1 }
 0x34d   : > { %v1511_v37 = vmax.f32 %v2593_v61, 1e-24 }
 0x34e   : > { %v1431_v63 = vpop.f32.mrf.mxu1 }
 0x34f   : > { %v1510_v2 = vmax.f32 %v1431_v63, 1e-24 }
 0x350   : > { %v2596_v45 = vpop.f32.mrf.mxu1 }
 0x351   : > { %2754 = vrsqrt.f32 %v1510_v2  ;;  %v1513_v5 = vmax.f32 %v2596_v45, 1e-24 }
 0x352   : > { %2756 = vrsqrt.f32 %v1511_v37  ;;  %v1441_v6 = vpop.f32.mrf.mxu1 }
 0x353   : > { %v1512_v7 = vmax.f32 %v1441_v6, 1e-24 }
 0x354   : > { %v2599_v8 = vpop.f32.mrf.mxu1 }
 0x355   : > { %2758 = vrsqrt.f32 %v1512_v7  ;;  %v1515_v12 = vmax.f32 %v2599_v8, 1e-24 }
 0x356   : > { %2760 = vrsqrt.f32 %v1513_v5  ;;  %v1451_v55 = vpop.f32.mrf.mxu1 }
 0x357   : > { %v1514_v13 = vmax.f32 %v1451_v55, 1e-24 }
 0x358   : > { %v2602_v18 = vpop.f32.mrf.mxu1 }
 0x359   : > { %2762 = vrsqrt.f32 %v1514_v13  ;;  %v1517_v19 = vmax.f32 %v2602_v18, 1e-24 }
 0x35a   : > { %2764 = vrsqrt.f32 %v1515_v12  ;;  %v1461_v0 = vpop.f32.mrf.mxu1 }
 0x35b   : > { %v1516_v22 = vmax.f32 %v1461_v0, 1e-24 }
 0x35c   : > { %v2605_v16 = vpop.f32.mrf.mxu1 }
 0x35d   : > { %2766 = vrsqrt.f32 %v1516_v22  ;;  %v1519_v10 = vmax.f32 %v2605_v16, 1e-24 }
 0x35e   : > { %v2755_v26 = vpop.eup %2754  ;;  %2768 = vrsqrt.f32 %v1517_v19  ;;  %v1471_v27 = vpop.f32.mrf.mxu1 }
 0x35f   : > { %v2757_v11 = vpop.eup %2756  ;;  %v1518_v30 = vmax.f32 %v1471_v27, 1e-24  ;;  %2617 = vmatprep.mubr.msk.f32.mxu0 %vm1006_vm2, %v2755_v26 }
 0x360   : > { %v2608_v31 = vpop.f32.mrf.mxu1  ;;  %2618 = vmatmul.mubr.msk.f32.vlgmr.msra.gmra.mxu0 %vm1006_vm2, %v2757_v11 }
 0x361   : > { %2770 = vrsqrt.f32 %v1518_v30  ;;  %v1521_v32 = vmax.f32 %v2608_v31, 1e-24 }
 0x362   : > { %v2759_v23 = vpop.eup %2758  ;;  %2772 = vrsqrt.f32 %v1519_v10  ;;  %v1481_v1 = vpop.f32.mrf.mxu1 }
 0x363   : > { %v2761_v17 = vpop.eup %2760  ;;  %v1520_v35 = vmax.f32 %v1481_v1, 1e-24  ;;  %2620 = vmatprep.mubr.msk.f32.mxu0 %vm1006_vm2, %v2759_v23 }
 0x364   : > { %v2611_v21 = vpop.f32.mrf.mxu1  ;;  %2621 = vmatmul.mubr.msk.f32.gmra.mxu0 %vm1006_vm2, %v2761_v17 }
 0x365   : > { %2774 = vrsqrt.f32 %v1520_v35  ;;  %v1523_v25 = vmax.f32 %v2611_v21, 1e-24 }
 0x366   : > { %v2763_v47 = vpop.eup %2762  ;;  %2776 = vrsqrt.f32 %v1521_v32  ;;  %v1491_v33 = vpop.f32.mrf.mxu1 }
 0x367   : > { %v2765_v20 = vpop.eup %2764  ;;  %v1522_v39 = vmax.f32 %v1491_v33, 1e-24  ;;  %2623 = vmatprep.mubr.msk.f32.mxu0 %vm1006_vm2, %v2763_v47 }
 0x368   : > { %v2614_v40 = vpop.f32.mrf.mxu1  ;;  %2624 = vmatmul.mubr.msk.f32.gmra.mxu0 %vm1006_vm2, %v2765_v20 }
 0x369   : > { %2778 = vrsqrt.f32 %v1522_v39  ;;  %v1525_v42 = vmax.f32 %v2614_v40, 1e-24 }
 0x36a   : > { %v2767_v41 = vpop.eup %2766  ;;  %2780 = vrsqrt.f32 %v1523_v25  ;;  %v1501_v46 = vpop.f32.mrf.mxu1 }
 0x36b   : > { %v2769_v48 = vpop.eup %2768  ;;  %v1524_v49 = vmax.f32 %v1501_v46, 1e-24  ;;  %2626 = vmatprep.mubr.msk.f32.mxu0 %vm1006_vm2, %v2767_v41 }
 0x36c   : > { %2627 = vmatmul.mubr.msk.f32.gmra.mxu0 %vm1006_vm2, %v2769_v48 }
 0x36d   : > { %2782 = vrsqrt.f32 %v1524_v49 }
 0x36e   : > { %v2771_v51 = vpop.eup %2770  ;;  %2784 = vrsqrt.f32 %v1525_v42 }
 0x36f   : > { %v2773_v28 = vpop.eup %2772  ;;  %2629 = vmatprep.mubr.msk.f32.mxu0 %vm1006_vm2, %v2771_v51 }
 0x370   : > { %2630 = vmatmul.mubr.msk.f32.gmra.mxu0 %vm1006_vm2, %v2773_v28 }
 0x372   : > { %v2775_v29 = vpop.eup %2774 }
 0x373   : > { %v2777_v53 = vpop.eup %2776  ;;  %2632 = vmatprep.mubr.msk.f32.mxu0 %vm1006_vm2, %v2775_v29 }
 0x374   : > { %2633 = vmatmul.mubr.msk.f32.gmra.mxu0 %vm1006_vm2, %v2777_v53 }
 0x376   : > { %v2779_v56 = vpop.eup %2778 }
 0x377   : > { %v2781_v44 = vpop.eup %2780  ;;  %2635 = vmatprep.mubr.msk.f32.mxu0 %vm1006_vm2, %v2779_v56 }
 0x378   : > { %2636 = vmatmul.mubr.msk.f32.gmra.mxu0 %vm1006_vm2, %v2781_v44 }
 0x37a   : > { %v2783_v58 = vpop.eup %2782 }
 0x37b   : > { %v2785_v59 = vpop.eup %2784  ;;  %2638 = vmatprep.mubr.msk.f32.mxu0 %vm1006_vm2, %v2783_v58 }
 0x37c   : > { %2639 = vmatmul.mubr.msk.f32.gmra.mxu0 %vm1006_vm2, %v2785_v59 }
 0x3af   : > { %v2561_v61 = vpop.f32.mrf.mxu0 }
 0x3b0   : > { %v1205_v37 = vmul.f32 %v2561_v61, %v3118_v43 }
 0x3b1   : > { %v1125_v63 = vpop.f32.mrf.mxu0 }
 0x3b2   : > { %v2374_v2 = vpack.c.bf16 %v1205_v37, %v1205_v37  ;;  %v1204_v45 = vmul.f32 %v1125_v63, %v3110_v38 }
 0x3b4   : > { %1286 = vst.msk [vmem:[%s3287_s18 + $0x4] sm:$0xf] %vm1284_vm3, %v2374_v2  ;;  %v2373_v5 = vpack.c.bf16 %v1204_v45, %v1204_v45  ;;  %v2564_v6 = vpop.f32.mrf.mxu0 }
 0x3b5   : > { %v1207_v7 = vmul.f32 %v2564_v6, %v3123_v24 }
 0x3b6   : > { %1285 = vst.msk [vmem:[%s3287_s18] sm:$0xf] %vm1284_vm3, %v2373_v5  ;;  %v1135_v8 = vpop.f32.mrf.mxu0 }
 0x3b7   : > { %v2376_v12 = vpack.c.bf16 %v1207_v7, %v1207_v7  ;;  %v1206_v55 = vmul.f32 %v1135_v8, %v3107_v34 }
 0x3b8   : > { %v2567_v13 = vpop.f32.mrf.mxu0 }
 0x3b9   : > { %1288 = vst.msk [vmem:[%s3287_s18 + $0xc] sm:$0xf] %vm1284_vm3, %v2376_v12  ;;  %v2375_v18 = vpack.c.bf16 %v1206_v55, %v1206_v55  ;;  %v1209_v19 = vmul.f32 %v2567_v13, %v3141_v36 }
 0x3ba   : > { %v1145_v0 = vpop.f32.mrf.mxu0 }
 0x3bb   : > { %1287 = vst.msk [vmem:[%s3287_s18 + $0x8] sm:$0xf] %vm1284_vm3, %v2375_v18  ;;  %v2378_v22 = vpack.c.bf16 %v1209_v19, %v1209_v19  ;;  %v1208_v16 = vmul.f32 %v1145_v0, %v3128_v50 }
 0x3bc   : > { %v2570_v26 = vpop.f32.mrf.mxu0 }
 0x3bd   : > { %1290 = vst.msk [vmem:[%s3287_s18 + $0x14] sm:$0xf] %vm1284_vm3, %v2378_v22  ;;  %v2377_v10 = vpack.c.bf16 %v1208_v16, %v1208_v16  ;;  %v1211_v27 = vmul.f32 %v2570_v26, %v3147_v57  ;;  %v2406_v16 = vpack.c.bf16 %v3118_v43, %v3118_v43  ;;  %v2405_v26 = vpack.c.bf16 %v3110_v38, %v3110_v38 }
 0x3be   : > { %v1155_v11 = vpop.f32.mrf.mxu0 }
 0x3bf   : > { %1289 = vst.msk [vmem:[%s3287_s18 + $0x10] sm:$0xf] %vm1284_vm3, %v2377_v10  ;;  %v2380_v30 = vpack.c.bf16 %v1211_v27, %v1211_v27  ;;  %v1210_v31 = vmul.f32 %v1155_v11, %v3134_v52  ;;  %v2408_v10 = vpack.c.bf16 %v3123_v24, %v3123_v24  ;;  %v2407_v27 = vpack.c.bf16 %v3107_v34, %v3107_v34 }
 0x3c0   : > { %v2573_v23 = vpop.f32.mrf.mxu0  ;;  %v2410_v11 = vpack.c.bf16 %v3141_v36, %v3141_v36 }
 0x3c1   : > { %1292 = vst.msk [vmem:[%s3287_s18 + $0x1c] sm:$0xf] %vm1284_vm3, %v2380_v30  ;;  %v2379_v32 = vpack.c.bf16 %v1210_v31, %v1210_v31  ;;  %v1213_v1 = vmul.f32 %v2573_v23, %v3169_v3  ;;  %v2409_v30 = vpack.c.bf16 %v3128_v50, %v3128_v50  ;;  %v2412_v31 = vpack.c.bf16 %v3147_v57, %v3147_v57 }
 0x3c2   : > { %v1165_v17 = vpop.f32.mrf.mxu0  ;;  %v2411_v23 = vpack.c.bf16 %v3134_v52, %v3134_v52 }
 0x3c3   : > { %1291 = vst.msk [vmem:[%s3287_s18 + $0x18] sm:$0xf] %vm1284_vm3, %v2379_v32  ;;  %v2382_v35 = vpack.c.bf16 %v1213_v1, %v1213_v1  ;;  %v1212_v21 = vmul.f32 %v1165_v17, %v3155_v60  ;;  %v2414_v32 = vpack.c.bf16 %v3169_v3, %v3169_v3  ;;  %v2413_v1 = vpack.c.bf16 %v3155_v60, %v3155_v60 }
 0x3c4   : > { %v2576_v47 = vpop.f32.mrf.mxu0  ;;  %v2416_v17 = vpack.c.bf16 %v3175_v4, %v3175_v4 }
 0x3c5   : > { %1294 = vst.msk [vmem:[%s3287_s18 + $0x24] sm:$0xf] %vm1284_vm3, %v2382_v35  ;;  %v2381_v25 = vpack.c.bf16 %v1212_v21, %v1212_v21  ;;  %v1215_v33 = vmul.f32 %v2576_v47, %v3175_v4  ;;  %v2415_v35 = vpack.c.bf16 %v3161_v62, %v3161_v62  ;;  %v2418_v21 = vpack.c.bf16 %v3197_v14, %v3197_v14 }
 0x3c6   : > { %v1175_v20 = vpop.f32.mrf.mxu0  ;;  %v2417_v47 = vpack.c.bf16 %v3183_v54, %v3183_v54 }
 0x3c7   : > { %1293 = vst.msk [vmem:[%s3287_s18 + $0x20] sm:$0xf] %vm1284_vm3, %v2381_v25  ;;  %v2384_v39 = vpack.c.bf16 %v1215_v33, %v1215_v33  ;;  %v1214_v40 = vmul.f32 %v1175_v20, %v3161_v62 }
 0x3c8   : > { %v2579_v41 = vpop.f32.mrf.mxu0 }
 0x3c9   : > { %1296 = vst.msk [vmem:[%s3287_s18 + $0x2c] sm:$0xf] %vm1284_vm3, %v2384_v39  ;;  %v2383_v42 = vpack.c.bf16 %v1214_v40, %v1214_v40  ;;  %v1217_v46 = vmul.f32 %v2579_v41, %v3197_v14 }
 0x3ca   : > { %v1185_v48 = vpop.f32.mrf.mxu0 }
 0x3cb   : > { %1295 = vst.msk [vmem:[%s3287_s18 + $0x28] sm:$0xf] %vm1284_vm3, %v2383_v42  ;;  %v2386_v49 = vpack.c.bf16 %v1217_v46, %v1217_v46  ;;  %v1216_v51 = vmul.f32 %v1185_v48, %v3183_v54 }
 0x3cc   : > { %v2582_v28 = vpop.f32.mrf.mxu0 }
 0x3cd   : > { %1298 = vst.msk [vmem:[%s3287_s18 + $0x34] sm:$0xf] %vm1284_vm3, %v2386_v49  ;;  %v2385_v29 = vpack.c.bf16 %v1216_v51, %v1216_v51  ;;  %v1219_v53 = vmul.f32 %v2582_v28, %v3203_v15 }
 0x3ce   : > { %v1195_v56 = vpop.f32.mrf.mxu0 }
 0x3cf   : > { %1297 = vst.msk [vmem:[%s3287_s18 + $0x30] sm:$0xf] %vm1284_vm3, %v2385_v29  ;;  %v2388_v44 = vpack.c.bf16 %v1219_v53, %v1219_v53  ;;  %v1218_v58 = vmul.f32 %v1195_v56, %v3189_v9 }
 0x3d1   : > { %1300 = vst.msk [vmem:[%s3287_s18 + $0x3c] sm:$0xf] %vm1284_vm3, %v2388_v44  ;;  %v2387_v59 = vpack.c.bf16 %v1218_v58, %v1218_v58 }
 0x3d3   : > { %1299 = vst.msk [vmem:[%s3287_s18 + $0x38] sm:$0xf] %vm1284_vm3, %v2387_v59 }
 0x420   : > { %v2619_v61 = vpop.f32.mrf.mxu0 }
 0x421   : > { %1753 = vrot.lane.b32.xlu1 %v2619_v61, %s2827_s10 }
 0x422   : > { %v1656_v37 = vpop.f32.mrf.mxu0 }
 0x423   : > { %1751 = vrot.lane.b32.xlu0 %v1656_v37, %s2827_s10 }
 0x424   : > { %v2622_v63 = vpop.f32.mrf.mxu0 }
 0x425   : > { %1757 = vrot.lane.b32.xlu1 %v2622_v63, %s2827_s10 }
 0x426   : > { %v1666_v2 = vpop.f32.mrf.mxu0 }
 0x427   : > { %1755 = vrot.lane.b32.xlu0 %v1666_v2, %s2827_s10 }
 0x428   : > { %v2625_v45 = vpop.f32.mrf.mxu0 }
 0x429   : > { %1761 = vrot.lane.b32.xlu1 %v2625_v45, %s2827_s10 }
 0x42a   : > { %v1676_v5 = vpop.f32.mrf.mxu0 }
 0x42b   : > { %1759 = vrot.lane.b32.xlu0 %v1676_v5, %s2827_s10 }
 0x42c   : > { %v2628_v6 = vpop.f32.mrf.mxu0 }
 0x42d   : > { %1765 = vrot.lane.b32.xlu1 %v2628_v6, %s2827_s10 }
 0x42e   : > { %v1686_v7 = vpop.f32.mrf.mxu0 }
 0x42f   : > { %1763 = vrot.lane.b32.xlu0 %v1686_v7, %s2827_s10 }
 0x430   : > { %v2631_v8 = vpop.f32.mrf.mxu0 }
 0x431   : > { %1769 = vrot.lane.b32.xlu1 %v2631_v8, %s2827_s10 }
 0x432   : > { %v1696_v12 = vpop.f32.mrf.mxu0 }
 0x433   : > { %1767 = vrot.lane.b32.xlu0 %v1696_v12, %s2827_s10 }
 0x434   : > { %v2634_v55 = vpop.f32.mrf.mxu0 }
 0x435   : > { %1773 = vrot.lane.b32.xlu1 %v2634_v55, %s2827_s10 }
 0x436   : > { %v1706_v13 = vpop.f32.mrf.mxu0 }
 0x437   : > { %1771 = vrot.lane.b32.xlu0 %v1706_v13, %s2827_s10 }
 0x438   : > { %v2637_v18 = vpop.f32.mrf.mxu0 }
 0x439   : > { %1777 = vrot.lane.b32.xlu1 %v2637_v18, %s2827_s10 }
 0x43a   : > { %v1716_v19 = vpop.f32.mrf.mxu0 }
 0x43b   : > { %1775 = vrot.lane.b32.xlu0 %v1716_v19, %s2827_s10 }
 0x43c   : > { %v2640_v0 = vpop.f32.mrf.mxu0 }
 0x43d   : > { %1781 = vrot.lane.b32.xlu1 %v2640_v0, %s2827_s10 }
 0x43e   : > { %v1726_v22 = vpop.f32.mrf.mxu0 }
 0x43f   : > { %1779 = vrot.lane.b32.xlu0 %v1726_v22, %s2827_s10 }
 0x441   : > { %1977 = vrot.lane.b32.xlu1 %v2406_v16, %s2828_s19 }
 0x443   : > { %1975 = vrot.lane.b32.xlu0 %v2405_v26, %s2828_s19 }
 0x445   : > { %1981 = vrot.lane.b32.xlu1 %v2408_v10, %s2828_s19  ;;  %v2420_v10 = vpack.c.bf16 %v3203_v15, %v3203_v15 }
 0x447   : > { %1979 = vrot.lane.b32.xlu0 %v2407_v27, %s2828_s19 }
 0x449   : > { %1985 = vrot.lane.b32.xlu1 %v2410_v11, %s2828_s19  ;;  %v2419_v11 = vpack.c.bf16 %v3189_v9, %v3189_v9 }
 0x44b   : > { %1983 = vrot.lane.b32.xlu0 %v2409_v30, %s2828_s19 }
 0x44d   : > { %1989 = vrot.lane.b32.xlu1 %v2412_v31, %s2828_s19 }
 0x44f   : > { %1987 = vrot.lane.b32.xlu0 %v2411_v23, %s2828_s19 }
 0x451   : > { %1993 = vrot.lane.b32.xlu1 %v2414_v32, %s2828_s19 }
 0x453   : > { %1991 = vrot.lane.b32.xlu0 %v2413_v1, %s2828_s19 }
 0x455   : > { %1997 = vrot.lane.b32.xlu1 %v2416_v17, %s2828_s19 }
 0x457   : > { %1995 = vrot.lane.b32.xlu0 %v2415_v35, %s2828_s19 }
 0x459   : > { %2001 = vrot.lane.b32.xlu1 %v2418_v21, %s2828_s19 }
 0x45b   : > { %1999 = vrot.lane.b32.xlu0 %v2417_v47, %s2828_s19 }
 0x493   : > { %v1754_v25 = vpop.permute.xlu1 %1753 }
 0x494   : > { %v1800_v33 = vmul.f32 %v1754_v25, %v3118_v43 }
 0x495   : > { %v1752_v20 = vpop.permute.xlu0 %1751 }
 0x496   : > { %v2390_v39 = vpack.c.bf16 %v1800_v33, %v1800_v33  ;;  %v1799_v40 = vmul.f32 %v1752_v20, %v3110_v38 }
 0x497   : > { %v1758_v41 = vpop.permute.xlu1 %1757 }
 0x498   : > { %v2389_v42 = vpack.c.bf16 %v1799_v40, %v1799_v40  ;;  %v1802_v46 = vmul.f32 %v1758_v41, %v3123_v24  ;;  %1865 = vrot.lane.b32.xlu1 %v2390_v39, %s2826_s12 }
 0x499   : > { %v1756_v48 = vpop.permute.xlu0 %1755 }
 0x49a   : > { %v2392_v49 = vpack.c.bf16 %v1802_v46, %v1802_v46  ;;  %v1801_v51 = vmul.f32 %v1756_v48, %v3107_v34  ;;  %1863 = vrot.lane.b32.xlu0 %v2389_v42, %s2826_s12 }
 0x49b   : > { %v1762_v28 = vpop.permute.xlu1 %1761 }
 0x49c   : > { %v2391_v29 = vpack.c.bf16 %v1801_v51, %v1801_v51  ;;  %v1804_v43 = vmul.f32 %v1762_v28, %v3141_v36  ;;  %1869 = vrot.lane.b32.xlu1 %v2392_v49, %s2826_s12 }
 0x49d   : > { %v1760_v53 = vpop.permute.xlu0 %1759 }
 0x49e   : > { %v2394_v38 = vpack.c.bf16 %v1804_v43, %v1804_v43  ;;  %v1803_v56 = vmul.f32 %v1760_v53, %v3128_v50  ;;  %1867 = vrot.lane.b32.xlu0 %v2391_v29, %s2826_s12 }
 0x49f   : > { %v1766_v24 = vpop.permute.xlu1 %1765 }
 0x4a0   : > { %v2393_v44 = vpack.c.bf16 %v1803_v56, %v1803_v56  ;;  %v1806_v58 = vmul.f32 %v1766_v24, %v3147_v57  ;;  %1873 = vrot.lane.b32.xlu1 %v2394_v38, %s2826_s12 }
 0x4a1   : > { %v1764_v34 = vpop.permute.xlu0 %1763 }
 0x4a2   : > { %v2396_v59 = vpack.c.bf16 %v1806_v58, %v1806_v58  ;;  %v1805_v61 = vmul.f32 %v1764_v34, %v3134_v52  ;;  %1871 = vrot.lane.b32.xlu0 %v2393_v44, %s2826_s12 }
 0x4a3   : > { %v1770_v36 = vpop.permute.xlu1 %1769 }
 0x4a4   : > { %v2395_v37 = vpack.c.bf16 %v1805_v61, %v1805_v61  ;;  %v1808_v63 = vmul.f32 %v1770_v36, %v3169_v3  ;;  %1877 = vrot.lane.b32.xlu1 %v2396_v59, %s2826_s12 }
 0x4a5   : > { %v1768_v50 = vpop.permute.xlu0 %1767 }
 0x4a6   : > { %v2398_v2 = vpack.c.bf16 %v1808_v63, %v1808_v63  ;;  %v1807_v45 = vmul.f32 %v1768_v50, %v3155_v60  ;;  %1875 = vrot.lane.b32.xlu0 %v2395_v37, %s2826_s12 }
 0x4a7   : > { %v1774_v57 = vpop.permute.xlu1 %1773 }
 0x4a8   : > { %v2397_v5 = vpack.c.bf16 %v1807_v45, %v1807_v45  ;;  %v1810_v6 = vmul.f32 %v1774_v57, %v3175_v4  ;;  %1881 = vrot.lane.b32.xlu1 %v2398_v2, %s2826_s12 }
 0x4a9   : > { %v1772_v52 = vpop.permute.xlu0 %1771 }
 0x4aa   : > { %v2400_v7 = vpack.c.bf16 %v1810_v6, %v1810_v6  ;;  %v1809_v8 = vmul.f32 %v1772_v52, %v3161_v62  ;;  %1879 = vrot.lane.b32.xlu0 %v2397_v5, %s2826_s12 }
 0x4ab   : > { %v1778_v3 = vpop.permute.xlu1 %1777 }
 0x4ac   : > { %v2399_v12 = vpack.c.bf16 %v1809_v8, %v1809_v8  ;;  %v1812_v55 = vmul.f32 %v1778_v3, %v3197_v14  ;;  %1885 = vrot.lane.b32.xlu1 %v2400_v7, %s2826_s12 }
 0x4ad   : > { %v1776_v60 = vpop.permute.xlu0 %1775 }
 0x4ae   : > { %v2402_v13 = vpack.c.bf16 %v1812_v55, %v1812_v55  ;;  %v1811_v18 = vmul.f32 %v1776_v60, %v3183_v54  ;;  %1883 = vrot.lane.b32.xlu0 %v2399_v12, %s2826_s12 }
 0x4af   : > { %v1782_v4 = vpop.permute.xlu1 %1781 }
 0x4b0   : > { %v2401_v19 = vpack.c.bf16 %v1811_v18, %v1811_v18  ;;  %v1814_v0 = vmul.f32 %v1782_v4, %v3203_v15  ;;  %1889 = vrot.lane.b32.xlu1 %v2402_v13, %s2826_s12 }
 0x4b1   : > { %v1780_v62 = vpop.permute.xlu0 %1779 }
 0x4b2   : > { %v2404_v14 = vpack.c.bf16 %v1814_v0, %v1814_v0  ;;  %v1813_v54 = vmul.f32 %v1780_v62, %v3189_v9  ;;  %1887 = vrot.lane.b32.xlu0 %v2401_v19, %s2826_s12 }
 0x4b3   : > { %v1978_v22 = vpop.permute.xlu1 %1977 }
 0x4b4   : > { %v2403_v16 = vpack.c.bf16 %v1813_v54, %v1813_v54  ;;  %2024 = vst.msk [vmem:[%s3426_s22 + $0x4] sm:$0xf] %vm1284_vm3, %v1978_v22  ;;  %1893 = vrot.lane.b32.xlu1 %v2404_v14, %s2826_s12 }
 0x4b5   : > { %v1976_v26 = vpop.permute.xlu0 %1975 }
 0x4b6   : > { %2023 = vst.msk [vmem:[%s3426_s22] sm:$0xf] %vm1284_vm3, %v1976_v26  ;;  %1891 = vrot.lane.b32.xlu0 %v2403_v16, %s2826_s12 }
 0x4b7   : > { %v1982_v27 = vpop.permute.xlu1 %1981 }
 0x4b8   : > { %2026 = vst.msk [vmem:[%s3426_s22 + $0xc] sm:$0xf] %vm1284_vm3, %v1982_v27  ;;  %2005 = vrot.lane.b32.xlu1 %v2420_v10, %s2828_s19 }
 0x4b9   : > { %v1980_v30 = vpop.permute.xlu0 %1979 }
 0x4ba   : > { %2025 = vst.msk [vmem:[%s3426_s22 + $0x8] sm:$0xf] %vm1284_vm3, %v1980_v30  ;;  %2003 = vrot.lane.b32.xlu0 %v2419_v11, %s2828_s19 }
 0x4bb   : > { %v1986_v31 = vpop.permute.xlu1 %1985 }
 0x4bc   : > { %2028 = vst.msk [vmem:[%s3426_s22 + $0x14] sm:$0xf] %vm1284_vm3, %v1986_v31 }
 0x4bd   : > { %v1984_v15 = vpop.permute.xlu0 %1983 }
 0x4be   : > { %2027 = vst.msk [vmem:[%s3426_s22 + $0x10] sm:$0xf] %vm1284_vm3, %v1984_v15 }
 0x4bf   : > { %v1990_v23 = vpop.permute.xlu1 %1989 }
 0x4c0   : > { %2030 = vst.msk [vmem:[%s3426_s22 + $0x1c] sm:$0xf] %vm1284_vm3, %v1990_v23 }
 0x4c1   : > { %v1988_v9 = vpop.permute.xlu0 %1987 }
 0x4c2   : > { %2029 = vst.msk [vmem:[%s3426_s22 + $0x18] sm:$0xf] %vm1284_vm3, %v1988_v9 }
 0x4c3   : > { %v1994_v32 = vpop.permute.xlu1 %1993 }
 0x4c4   : > { %2032 = vst.msk [vmem:[%s3426_s22 + $0x24] sm:$0xf] %vm1284_vm3, %v1994_v32 }
 0x4c5   : > { %v1992_v1 = vpop.permute.xlu0 %1991 }
 0x4c6   : > { %2031 = vst.msk [vmem:[%s3426_s22 + $0x20] sm:$0xf] %vm1284_vm3, %v1992_v1 }
 0x4c7   : > { %v1998_v17 = vpop.permute.xlu1 %1997 }
 0x4c8   : > { %2034 = vst.msk [vmem:[%s3426_s22 + $0x2c] sm:$0xf] %vm1284_vm3, %v1998_v17 }
 0x4c9   : > { %v1996_v35 = vpop.permute.xlu0 %1995 }
 0x4ca   : > { %2033 = vst.msk [vmem:[%s3426_s22 + $0x28] sm:$0xf] %vm1284_vm3, %v1996_v35 }
 0x4cb   : > { %v2002_v21 = vpop.permute.xlu1 %2001 }
 0x4cc   : > { %2036 = vst.msk [vmem:[%s3426_s22 + $0x34] sm:$0xf] %vm1284_vm3, %v2002_v21 }
 0x4cd   : > { %v2000_v47 = vpop.permute.xlu0 %1999 }
 0x4ce   : > { %2035 = vst.msk [vmem:[%s3426_s22 + $0x30] sm:$0xf] %vm1284_vm3, %v2000_v47 }
 0x50a   : > { %v1866_v25 = vpop.permute.xlu1 %1865 }
 0x50b   : > { %1912 = vst.msk [vmem:[%s3470_s25 + $0x4] sm:$0xf] %vm1284_vm3, %v1866_v25 }
 0x50c   : > { %v1864_v33 = vpop.permute.xlu0 %1863 }
 0x50d   : > { %1911 = vst.msk [vmem:[%s3470_s25] sm:$0xf] %vm1284_vm3, %v1864_v33 }
 0x50e   : > { %v1870_v20 = vpop.permute.xlu1 %1869 }
 0x50f   : > { %1914 = vst.msk [vmem:[%s3470_s25 + $0xc] sm:$0xf] %vm1284_vm3, %v1870_v20 }
 0x510   : > { %v1868_v39 = vpop.permute.xlu0 %1867 }
 0x511   : > { %1913 = vst.msk [vmem:[%s3470_s25 + $0x8] sm:$0xf] %vm1284_vm3, %v1868_v39 }
 0x512   : > { %v1874_v40 = vpop.permute.xlu1 %1873 }
 0x513   : > { %1916 = vst.msk [vmem:[%s3470_s25 + $0x14] sm:$0xf] %vm1284_vm3, %v1874_v40 }
 0x514   : > { %v1872_v41 = vpop.permute.xlu0 %1871 }
 0x515   : > { %1915 = vst.msk [vmem:[%s3470_s25 + $0x10] sm:$0xf] %vm1284_vm3, %v1872_v41 }
 0x516   : > { %v1878_v42 = vpop.permute.xlu1 %1877 }
 0x517   : > { %1918 = vst.msk [vmem:[%s3470_s25 + $0x1c] sm:$0xf] %vm1284_vm3, %v1878_v42 }
 0x518   : > { %v1876_v46 = vpop.permute.xlu0 %1875 }
 0x519   : > { %1917 = vst.msk [vmem:[%s3470_s25 + $0x18] sm:$0xf] %vm1284_vm3, %v1876_v46 }
 0x51a   : > { %v1882_v48 = vpop.permute.xlu1 %1881 }
 0x51b   : > { %1920 = vst.msk [vmem:[%s3470_s25 + $0x24] sm:$0xf] %vm1284_vm3, %v1882_v48 }
 0x51c   : > { %v1880_v49 = vpop.permute.xlu0 %1879 }
 0x51d   : > { %1919 = vst.msk [vmem:[%s3470_s25 + $0x20] sm:$0xf] %vm1284_vm3, %v1880_v49 }
 0x51e   : > { %v1886_v51 = vpop.permute.xlu1 %1885 }
 0x51f   : > { %1922 = vst.msk [vmem:[%s3470_s25 + $0x2c] sm:$0xf] %vm1284_vm3, %v1886_v51 }
 0x520   : > { %v1884_v28 = vpop.permute.xlu0 %1883 }
 0x521   : > { %1921 = vst.msk [vmem:[%s3470_s25 + $0x28] sm:$0xf] %vm1284_vm3, %v1884_v28 }
 0x522   : > { %v1890_v29 = vpop.permute.xlu1 %1889 }
 0x523   : > { %1924 = vst.msk [vmem:[%s3470_s25 + $0x34] sm:$0xf] %vm1284_vm3, %v1890_v29 }
 0x524   : > { %v1888_v43 = vpop.permute.xlu0 %1887 }
 0x525   : > { %1923 = vst.msk [vmem:[%s3470_s25 + $0x30] sm:$0xf] %vm1284_vm3, %v1888_v43 }
 0x526   : > { %v1894_v53 = vpop.permute.xlu1 %1893 }
 0x527   : > { %1926 = vst.msk [vmem:[%s3470_s25 + $0x3c] sm:$0xf] %vm1284_vm3, %v1894_v53 }
 0x528   : > { %v1892_v38 = vpop.permute.xlu0 %1891 }
 0x529   : > { %1925 = vst.msk [vmem:[%s3470_s25 + $0x38] sm:$0xf] %vm1284_vm3, %v1892_v38 }
 0x52a   : > { %v2006_v56 = vpop.permute.xlu1 %2005 }
 0x52b   : > { %2038 = vst.msk [vmem:[%s3426_s22 + $0x3c] sm:$0xf] %vm1284_vm3, %v2006_v56 }
 0x52c   : > { %v2004_v24 = vpop.permute.xlu0 %2003 }
 0x52d   : > { %2037 = vst.msk [vmem:[%s3426_s22 + $0x38] sm:$0xf] %vm1284_vm3, %v2004_v24 }
 0x52e PF: > { %s18_s28 = sadd.s32 1, %s2824_s28   ;;  %s3531_s24 = smov %s2816_s26 }
 0x52f   : > { %p15_p7 = scmp.ge.s32.totalorder %s18_s28, 6   ;;  %s3532_s25 = smov %s2820_s27 }
 0x530   : > { %s3533_s26 = smov %s3536_s29  ;;  %s3534_s27 = smov %s3540_s30 }
 0x531   :  { %17 = sbr.rel (!%p15_p7) target bundleno = 3 (0x3), region = 94 }

</bundles_post_ra>
